<compile_context>
chip_gen: v5e
topology: v5e:2x2
jax: 0.10.0
libtpu: 0.0.40
codegen_flags: <defaults>
</compile_context>

<pallas_src>
import functools

import jax
import jax.numpy as jnp
from jax.experimental import pallas as pl
from jax.experimental.pallas import tpu as pltpu


def _conv3x3_sigmoid_kernel(xw_ref, w_ref, b_ref, out_ref, *, TH, W, Cin, Cout):
    """One (batch, H-tile) grid step.

    xw_ref : (1, 1, TH+2, (W+2)*Cin)  overlapping padded-input window
    w_ref  : (3, 3*Cin, Cout)         one (ky,ci)->Cout matrix per kx tap
    b_ref  : (1, W*Cout)              bias pre-tiled to the lane-dense layout
    out_ref: (1, TH, W*Cout)
    """
    Wp = W + 2
    xw = xw_ref[0, 0]                                    # (TH+2, Wp*Cin)

    # The 3 ky row-windows are plain sublane slices of the single overlapping
    # window, stacked once along the channel axis:
    #   y[r, wp, ky*Cin + ci] = x_pad[row0 + r + ky, wp, ci]
    y = jnp.concatenate(
        [xw[ky:ky + TH, :].reshape(TH, Wp, Cin) for ky in range(3)], axis=-1)

    # 3 MXU matmuls with K = 3*Cin; each kx tap is a contiguous slice of `y`
    # (no 9-tap im2col materialization).  Accumulation stays f32 on-chip.
    acc = jnp.dot(y[:, 0:W, :], w_ref[0], preferred_element_type=jnp.float32)
    for kx in (1, 2):
        acc = acc + jnp.dot(y[:, kx:kx + W, :], w_ref[kx],
                            preferred_element_type=jnp.float32)

    # Lane-dense epilogue: reshape FIRST, then bias + sigmoid on (TH, W*Cout).
    z = acc.reshape(TH, W * Cout) + b_ref[...]
    y_out = 0.5 * jnp.tanh(0.5 * z) + 0.5                # sigmoid via EUP tanh
    out_ref[0] = y_out.astype(out_ref.dtype)


def _vmem_budget_and_limit():
    """Generation-aware per-tile VMEM budget and scoped-VMEM limit."""
    cap = 128 * 1024 * 1024
    try:
        info_fn = getattr(pltpu, "get_tpu_info", None)
        if info_fn is not None:
            cap = getattr(info_fn(), "vmem_capacity_bytes", cap) or cap
    except Exception:
        pass
    if cap <= 64 * 1024 * 1024:                  # v7x-class: 64 MiB per core
        return 16 * 1024 * 1024, 48 * 1024 * 1024
    return 20 * 1024 * 1024, 64 * 1024 * 1024    # v5e / v6e: 128 MiB physical


def _choose_tile_h(Hp, B, W, Cin, Cout, in_item, out_item, row_unit,
                   vmem_budget_bytes, min_grid_steps=8):
    """Largest multiple-of-row_unit divisor of Hp whose per-step working set
    fits the VMEM budget, backed off so the grid keeps >= min_grid_steps steps
    (software pipelining + both v7x TensorCores)."""
    cands = [th for th in range(row_unit, Hp + 1, row_unit) if Hp % th == 0]
    if not cands:
        return Hp
    Lin, Lout = (W + 2) * Cin, W * Cout

    def est_bytes(th):
        b = 2 * (th + 2) * Lin * in_item         # input window (double buffered)
        b += 2 * th * Lout * out_item            # output block (double buffered)
        b += 3 * th * Lin * in_item              # ky-stacked window `y`
        b += th * W * 3 * Cin * in_item          # live kx matmul operand
        b += th * W * Cout * 4                   # f32 accumulator
        b += 2 * th * Lout * 4                   # epilogue temporaries
        b += 9 * Cin * Cout * in_item + Lout * 4
        return b

    fitting = [c for c in cands if est_bytes(c) <= vmem_budget_bytes]
    th = max(fitting) if fitting else cands[0]
    while B * (Hp // th) < min_grid_steps:
        smaller = [c for c in cands if c < th]
        if not smaller:
            break
        th = smaller[-1]
    return th


def basic_block_sig_forward(x_nchw, w, b, *, compute_dtype=jnp.bfloat16):
    """x_nchw: (B, Cin, H, W); w: (Cout, Cin, 3, 3); b: (Cout,).

    Returns sigmoid(conv2d(x, w, b, stride=1, pad=1)) in NCHW, matching
    PyTorch's BasicBlockSig.forward.  Default compute dtype is bf16 (fast MXU
    path on v5e/v6e/v7x; accumulation stays f32); pass compute_dtype=f32 for
    bit-tight accuracy.
    """
    B, Cin, H, W = x_nchw.shape
    Cout = w.shape[0]
    assert w.shape == (Cout, Cin, 3, 3)
    out_dtype = x_nchw.dtype

    in_item = jnp.dtype(compute_dtype).itemsize
    out_item = jnp.dtype(out_dtype).itemsize
    row_unit = 16 if min(in_item, out_item) < 4 else 8   # bf16 sublane packing

    vmem_budget, vmem_limit = _vmem_budget_and_limit()
    Hp = ((H + row_unit - 1) // row_unit) * row_unit
    TH = _choose_tile_h(Hp, B, W, Cin, Cout, in_item, out_item, row_unit,
                        vmem_budget)
    nT = Hp // TH
    Lin, Lout = (W + 2) * Cin, W * Cout

    # NHWC (channels on the lane axis).  In a full NHWC model this transpose,
    # the pad and the window duplication below would be fused / done once.
    # TODO(synk): keep activations NHWC end-to-end (and fold the zero pad into
    # the kernel via masking) to drop these wrapper-side HBM passes.
    x = jnp.transpose(x_nchw, (0, 2, 3, 1))              # (B, H, W, Cin)

    # Zero pad: 1 row top, Hp-H+1 rows bottom, 1 column left/right; cast to
    # the compute dtype (bf16 halves input DMA bytes and VMEM footprint).
    xpad = jnp.pad(x, ((0, 0), (1, Hp - H + 1), (1, 1), (0, 0)))
    xpad = xpad.astype(compute_dtype).reshape(B, Hp + 2, Lin)

    # Overlapping (TH+2)-row windows: a SINGLE BlockSpec per grid step now
    # carries the tile plus its 2-row halo, all blocks full-dim aligned.
    # TODO(synk): an Element-indexed row window would avoid the 2/TH duplicate.
    xwin = jnp.stack([xpad[:, t * TH:t * TH + TH + 2, :] for t in range(nT)],
                     axis=1)                             # (B, nT, TH+2, Lin)

    # PyTorch (Cout, Cin, kH, kW) -> (kx, ky*Cin+ci, Cout): one (3*Cin, Cout)
    # matrix per kx, matching the (ky, ci) channel stacking inside the kernel.
    wmat = jnp.transpose(w, (3, 2, 1, 0)).reshape(3, 3 * Cin, Cout)
    wmat = wmat.astype(compute_dtype)
    # Bias pre-tiled to the lane-dense output layout (lane-dense epilogue).
    brow = jnp.tile(b.astype(jnp.float32), W).reshape(1, Lout)

    kernel = functools.partial(_conv3x3_sigmoid_kernel,
                               TH=TH, W=W, Cin=Cin, Cout=Cout)
    cost = pl.CostEstimate(
        flops=2 * B * Hp * W * 9 * Cin * Cout,
        transcendentals=B * Hp * W * Cout,
        bytes_accessed=(int(xwin.size) * in_item + B * Hp * Lout * out_item
                        + int(wmat.size) * in_item + int(brow.size) * 4),
    )

    out_flat = pl.pallas_call(
        kernel,
        out_shape=jax.ShapeDtypeStruct((B, Hp, Lout), out_dtype),
        grid_spec=pltpu.PrefetchScalarGridSpec(
            num_scalar_prefetch=0,
            grid=(B, nT),
            in_specs=[
                pl.BlockSpec((1, 1, TH + 2, Lin), lambda bi, ti: (bi, ti, 0, 0)),
                pl.BlockSpec((3, 3 * Cin, Cout), lambda bi, ti: (0, 0, 0)),
                pl.BlockSpec((1, Lout), lambda bi, ti: (0, 0)),
            ],
            out_specs=pl.BlockSpec((1, TH, Lout), lambda bi, ti: (bi, ti, 0)),
        ),
        compiler_params=pltpu.CompilerParams(
            dimension_semantics=("parallel", "parallel"),
            vmem_limit_bytes=vmem_limit),
        cost_estimate=cost,
    )(xwin, wmat, brow)

    out = out_flat.reshape(B, Hp, W, Cout)[:, :H]        # (B, H, W, Cout)
    return jnp.transpose(out, (0, 3, 1, 2))              # back to NCHW


def _reference(x_nchw, w, b):
    """Pure-JAX reference: conv2d(k=3, s=1, pad=1) + sigmoid, NCHW."""
    y = jax.lax.conv_general_dilated(
        x_nchw, w, window_strides=(1, 1), padding=((1, 1), (1, 1)),
        dimension_numbers=("NCHW", "OIHW", "NCHW"))
    return jax.nn.sigmoid(y + b.reshape(1, -1, 1, 1))


if __name__ == "__main__":
    B, Cin, Cout, H, W = 2, 4, 4, 16, 16
    key = jax.random.PRNGKey(0)
    kx_, kw_, kb_ = jax.random.split(key, 3)

    x = jax.random.normal(kx_, (B, Cin, H, W), jnp.float32)
    s = 1.0 / (Cin * 9) ** 0.5          # PyTorch Conv2d default init range
    w = jax.random.uniform(kw_, (Cout, Cin, 3, 3), jnp.float32, -s, s)
    b = jax.random.uniform(kb_, (Cout,), jnp.float32, -s, s)

    ref = jax.block_until_ready(_reference(x, w, b))

    # Exact-precision path: tight check against the XLA reference.
    out_f32 = jax.block_until_ready(
        basic_block_sig_forward(x, w, b, compute_dtype=jnp.float32))
    assert out_f32.shape == (B, Cout, H, W)
    assert jnp.allclose(out_f32, ref, atol=1e-4, rtol=1e-4), "f32 path mismatch"

    # Default fast path: bf16 inputs/weights on the MXU, f32 accumulation.
    out_bf16 = jax.block_until_ready(basic_block_sig_forward(x, w, b))
    assert out_bf16.shape == (B, Cout, H, W)
    assert jnp.allclose(out_bf16, ref, atol=2e-2, rtol=2e-2), "bf16 path mismatch"

    print("KERNEL_OK")
</pallas_src>

<mosaic_0001>
module attributes {stable_mosaic.version = 11 : i64} {
  func.func @_conv3x3_sigmoid_kernel(%arg0: i32, %arg1: i32, %arg2: memref<1x1x10x72xf32, #tpu.memory_space<vmem>>, %arg3: memref<3x12x4xf32, #tpu.memory_space<vmem>>, %arg4: memref<1x64xf32, #tpu.memory_space<vmem>>, %arg5: memref<1x8x64xf32, #tpu.memory_space<vmem>>) attributes {dimension_semantics = [#tpu.dimension_semantics<parallel>, #tpu.dimension_semantics<parallel>], iteration_bounds = array<i64: 2, 2>, scalar_prefetch = 0 : i64, scratch_operands = 0 : i64, tpu.core_type = #tpu.core_type<tc>, window_params = [{transform_indices = @transform_0, window_bounds = array<i64: 1, 1, 10, 72>}, {pipeline_mode = #tpu.pipeline_mode<synchronous>, transform_indices = @transform_1, window_bounds = array<i64: 3, 12, 4>}, {pipeline_mode = #tpu.pipeline_mode<synchronous>, transform_indices = @transform_2, window_bounds = array<i64: 1, 64>}, {transform_indices = @transform_3, window_bounds = array<i64: 1, 8, 64>}]} {
    %c0 = arith.constant 0 : index
    %c0_0 = arith.constant 0 : index
    %c0_1 = arith.constant 0 : index
    %c0_2 = arith.constant 0 : index
    %0 = vector.load %arg2[%c0, %c0_0, %c0_1, %c0_2] : memref<1x1x10x72xf32, #tpu.memory_space<vmem>>, vector<1x1x10x72xf32>
    %1 = vector.shape_cast %0 : vector<1x1x10x72xf32> to vector<10x72xf32>
    %2 = vector.extract_strided_slice %1 {offsets = [0, 0], sizes = [8, 72], strides = [1, 1]} : vector<10x72xf32> to vector<8x72xf32>
    %3 = vector.shape_cast %2 : vector<8x72xf32> to vector<8x18x4xf32>
    %4 = vector.extract_strided_slice %1 {offsets = [1, 0], sizes = [8, 72], strides = [1, 1]} : vector<10x72xf32> to vector<8x72xf32>
    %5 = vector.shape_cast %4 : vector<8x72xf32> to vector<8x18x4xf32>
    %6 = vector.extract_strided_slice %1 {offsets = [2, 0], sizes = [8, 72], strides = [1, 1]} : vector<10x72xf32> to vector<8x72xf32>
    %7 = vector.shape_cast %6 : vector<8x72xf32> to vector<8x18x4xf32>
    %8 = tpu.concatenate %3, %5, %7 in 2 : vector<8x18x4xf32>, vector<8x18x4xf32>, vector<8x18x4xf32> -> vector<8x18x12xf32>
    %9 = vector.extract_strided_slice %8 {offsets = [0, 0, 0], sizes = [8, 16, 12], strides = [1, 1, 1]} : vector<8x18x12xf32> to vector<8x16x12xf32>
    %c0_3 = arith.constant 0 : index
    %c0_4 = arith.constant 0 : index
    %c0_5 = arith.constant 0 : index
    %10 = vector.load %arg3[%c0_3, %c0_4, %c0_5] : memref<3x12x4xf32, #tpu.memory_space<vmem>>, vector<1x12x4xf32>
    %11 = vector.shape_cast %10 : vector<1x12x4xf32> to vector<12x4xf32>
    %cst = arith.constant dense<0.000000e+00> : vector<8x16x4xf32>
    %12 = tpu.matmul %9, %11, %cst {dimension_numbers = #tpu.dot_dimension_numbers<[2], [0], [0, 1], [1], [0, 0, 0, 1, 1, 1], [], []>} : vector<8x16x12xf32>, vector<12x4xf32>, vector<8x16x4xf32> -> vector<8x16x4xf32>
    %13 = vector.extract_strided_slice %8 {offsets = [0, 1, 0], sizes = [8, 16, 12], strides = [1, 1, 1]} : vector<8x18x12xf32> to vector<8x16x12xf32>
    %c1 = arith.constant 1 : index
    %c0_6 = arith.constant 0 : index
    %c0_7 = arith.constant 0 : index
    %14 = vector.load %arg3[%c1, %c0_6, %c0_7] : memref<3x12x4xf32, #tpu.memory_space<vmem>>, vector<1x12x4xf32>
    %15 = vector.shape_cast %14 : vector<1x12x4xf32> to vector<12x4xf32>
    %cst_8 = arith.constant dense<0.000000e+00> : vector<8x16x4xf32>
    %16 = tpu.matmul %13, %15, %cst_8 {dimension_numbers = #tpu.dot_dimension_numbers<[2], [0], [0, 1], [1], [0, 0, 0, 1, 1, 1], [], []>} : vector<8x16x12xf32>, vector<12x4xf32>, vector<8x16x4xf32> -> vector<8x16x4xf32>
    %17 = arith.addf %12, %16 : vector<8x16x4xf32>
    %18 = vector.extract_strided_slice %8 {offsets = [0, 2, 0], sizes = [8, 16, 12], strides = [1, 1, 1]} : vector<8x18x12xf32> to vector<8x16x12xf32>
    %c2 = arith.constant 2 : index
    %c0_9 = arith.constant 0 : index
    %c0_10 = arith.constant 0 : index
    %19 = vector.load %arg3[%c2, %c0_9, %c0_10] : memref<3x12x4xf32, #tpu.memory_space<vmem>>, vector<1x12x4xf32>
    %20 = vector.shape_cast %19 : vector<1x12x4xf32> to vector<12x4xf32>
    %cst_11 = arith.constant dense<0.000000e+00> : vector<8x16x4xf32>
    %21 = tpu.matmul %18, %20, %cst_11 {dimension_numbers = #tpu.dot_dimension_numbers<[2], [0], [0, 1], [1], [0, 0, 0, 1, 1, 1], [], []>} : vector<8x16x12xf32>, vector<12x4xf32>, vector<8x16x4xf32> -> vector<8x16x4xf32>
    %22 = arith.addf %17, %21 : vector<8x16x4xf32>
    %23 = vector.shape_cast %22 : vector<8x16x4xf32> to vector<8x64xf32>
    %c0_12 = arith.constant 0 : index
    %c0_13 = arith.constant 0 : index
    %24 = vector.load %arg4[%c0_12, %c0_13] : memref<1x64xf32, #tpu.memory_space<vmem>>, vector<1x64xf32>
    %25 = vector.broadcast %24 : vector<1x64xf32> to vector<8x64xf32>
    %26 = arith.addf %23, %25 : vector<8x64xf32>
    %cst_14 = arith.constant 5.000000e-01 : f32
    %27 = vector.broadcast %cst_14 : f32 to vector<8x64xf32>
    %28 = arith.mulf %27, %26 : vector<8x64xf32>
    %29 = math.tanh %28 : vector<8x64xf32>
    %cst_15 = arith.constant 5.000000e-01 : f32
    %30 = vector.broadcast %cst_15 : f32 to vector<8x64xf32>
    %31 = arith.mulf %30, %29 : vector<8x64xf32>
    %cst_16 = arith.constant 5.000000e-01 : f32
    %32 = vector.broadcast %cst_16 : f32 to vector<8x64xf32>
    %33 = arith.addf %31, %32 : vector<8x64xf32>
    %c0_17 = arith.constant 0 : index
    %c0_18 = arith.constant 0 : index
    %c0_19 = arith.constant 0 : index
    %34 = vector.load %arg5[%c0_17, %c0_18, %c0_19] : memref<1x8x64xf32, #tpu.memory_space<vmem>>, vector<1x8x64xf32>
    %35 = vector.shape_cast %34 : vector<1x8x64xf32> to vector<8x64xf32>
    %36 = vector.shape_cast %33 : vector<8x64xf32> to vector<1x8x64xf32>
    tpu.vector_store %arg5[%c0_17, %c0_18, %c0_19], %36 {strides = array<i32>} : memref<1x8x64xf32, #tpu.memory_space<vmem>>, vector<1x8x64xf32>,
    return
  }
  func.func @transform_0(%arg0: i32, %arg1: i32) -> (i32, i32, i32, i32) {
    %c0_i32 = arith.constant 0 : i32
    %c0_i32_0 = arith.constant 0 : i32
    %c0_i32_1 = arith.constant 0 : i32
    return %arg0, %arg1, %c0_i32, %c0_i32_0 : i32, i32, i32, i32
  }
  func.func @transform_1(%arg0: i32, %arg1: i32) -> (i32, i32, i32) {
    %c0_i32 = arith.constant 0 : i32
    %c0_i32_0 = arith.constant 0 : i32
    %c0_i32_1 = arith.constant 0 : i32
    %c0_i32_2 = arith.constant 0 : i32
    return %c0_i32, %c0_i32_0, %c0_i32_1 : i32, i32, i32
  }
  func.func @transform_2(%arg0: i32, %arg1: i32) -> (i32, i32) {
    %c0_i32 = arith.constant 0 : i32
    %c0_i32_0 = arith.constant 0 : i32
    %c0_i32_1 = arith.constant 0 : i32
    return %c0_i32, %c0_i32_0 : i32, i32
  }
  func.func @transform_3(%arg0: i32, %arg1: i32) -> (i32, i32, i32) {
    %c0_i32 = arith.constant 0 : i32
    %c0_i32_0 = arith.constant 0 : i32
    return %arg0, %arg1, %c0_i32 : i32, i32, i32
  }
}

</mosaic_0001>

<bundles_post_ra>
// kernel: tpu_custom_call.1
= control target key start
LH: loop header
LB: loop body
LE: loop exit
PB: predicated region body
PF: predicated region fallthrough
CT: control target
= control target key end

     0   :  { %8 = vsyncpa [#allocation3], 0  ;;  %s4309_s0 = inlined_call_operand.vmem [shape: f32[2,2,10,72], index: 0, kind: input, shape index: {}]   ;;  %s4310_s1 = inlined_call_operand.vmem [shape: f32[3,12,4], index: 1, kind: input, shape index: {}]   ;;  %s4311_s2 = inlined_call_operand.vmem [shape: f32[1,64], index: 2, kind: input, shape index: {}]   ;;  %s4312_s3 = inlined_call_operand.hbm [shape: f32[2,16,64], index: 3, kind: output, shape index: {}]  }
   0x1   :  { %10 = vsyncpa [#allocation3 + $0x1], 0  ;;  %s2686_s12 = smov 0   ;;  %s2688_s13 = smov 0  }
   0x2   :  { %s2690_s14 = smov 0   ;;  %s2692_s15 = smov 0  }
   0x3   :  { %s2694_s16 = smov 0   ;;  %s2696_s17 = smov 0  }
   0x4   :  { %s2698_s18 = smov 0   ;;  %s2700_s19 = smov 0  }
   0x5 LB: > { %s2354_s20 = sadd.s32 4294967295, %s2631_s19   ;;  %s2355_s21 = sadd.s32 4294967294, %s2631_s19   ;;  %s2631_s19 = sphi %s2700_s19, %s16_s19   ;;  %s2627_s18 = sphi %s2698_s18, %s4416_s18   ;;  %s2623_s17 = sphi %s2696_s17, %s4415_s17   ;;  %s2619_s16 = sphi %s2694_s16, %s4414_s16   ;;  %s2615_s15 = sphi %s2692_s15, %s4413_s15   ;;  %s2611_s14 = sphi %s2690_s14, %s4412_s14   ;;  %s2607_s13 = sphi %s2688_s13, %s4411_s13   ;;  %s2603_s12 = sphi %s2686_s12, %s4410_s12  }
   0x6   : > { %s25_s22 = sadd.s32 1, %s2623_s17  ;;  %s28_s23 = sadd.s32 1, %s2627_s18 }
   0x7   : > { %p26_p0 = scmp.ge.s32.totalorder %s25_s22, 2  ;;  %p117_p1 = scmp.ne.s32.totalorder %s2611_s14, %s2607_s13 }
   0x8   : > { %p118_p2 = scmp.eq.s32.totalorder %s2354_s20, 3  ;;  %p123_p5 = scmp.ne.s32.totalorder %s2607_s13, %s2603_s12 }
   0x9   : > { %s4418_s22 = smov (%p26_p0, %s25_s22), 0  ;;  %s4420_s23 = smov (!%p26_p0, %s28_s23), %s2627_s18 }
   0xa   : > { %s103_s24 = ssub.s32 %s2623_s17, %s4418_s22  ;;  %p2737_p3 = por %p118_p2, %p117_p1 }
   0xb   : > { %p30_p4 = scmp.ge.s32.totalorder %s4420_s23, 2  ;;  %p124_p6 = scmp.eq.s32.totalorder %s2355_s21, 3 }
   0xc   : > { %p2358_p7 = scmp.ge.s32.totalorder %s2631_s19, 1  ;;  %p160_p9 = scmp.lt.s32.totalorder %s2631_s19, 5 }
   0xd   : > { %s4422_s23 = smov (%p30_p4, %s4420_s23), 0  ;;  %p2746_p8 = por %p124_p6, %p123_p5 }
   0xe   : > { %s102_s27 = ssub.s32 %s2627_s18, %s4422_s23  ;;  %s107_s28 = sadd.s32 1, %s2611_s14 }
   0xf   : > { %s104_s29 = sor.u32 %s103_s24, %s102_s27  ;;  %p161_p10 = pnand %p2358_p7, %p160_p9 }
  0x10   : > { %p105_p11 = scmp.eq.s32.totalorder %s104_s29, 0 }
  0x11   : > { %164 = sbr.rel (%p161_p10) target bundleno = 798 (0x31e), region = 32 }
  0x12   : > { %s2755_s30 = scalar_select %p105_p11, %s2611_s14, %s107_s28  }
  0x16   : > { %p188_p12 = scmp.lt.s32.totalorder %s2619_s16, 1  ;;  %p190_p13 = scmp.lt.s32.totalorder %s2615_s15, 1  ;;  %vm252_vm0 = vcmask 1047556   ;;  %vm563_vm1 = vcmask 1046528   ;;  %vm912_vm2 = vcmask 1045504   ;;  %vm1605_vm3 = vcmask 1043456  }
  0x17   : > { %s2633_s21 = smov 112   ;;  %s2634_s24 = smov 108   ;;  %vm1453_vm4 = vcmask 31744   ;;  %vm1478_vm5 = vcmask 64512   ;;  %vm1572_vm6 = vcmask 97280   ;;  %vm2220_vm7 = vcmask 130048  }
  0x18   : > { %s189_s4 = scalar_select %p188_p12, %s2619_s16, 1  ;;  %vm2222_vm8 = vcmask 162816   ;;  %vm2224_vm9 = vcmask 195584   ;;  %vm2226_vm10 = vcmask 228352   ;;  %vm2228_vm11 = vcmask 261120  }
  0x19   : > { %s191_s5 = scalar_select %p190_p13, %s2615_s15, 1  ;;  %vm2230_vm12 = vcmask 293888   ;;  %vm2232_vm13 = vcmask 326656   ;;  %vm2234_vm14 = vcmask 359424   ;;  %vm2236_vm15 = vcmask 392192  }
  0x1a   : > { %s2361_s6 = sshll.u32 %s189_s4, 2  ;;  %s2635_s27 = smov 80  }
  0x1b   : > { %s2360_s7 = sshll.u32 %s191_s5, 1  ;;  %s2636_s28 = smov 104  }
  0x1c   : > { %s194_s8 = sadd.s32 %s2361_s6, %s2360_s7  ;;  %s2637_s29 = smov 96  }
  0x1d   : > { %s2362_s9 = sshll.u32 %s194_s8, 3  ;;  %s2638_s4 = smov 100  }
  0x1e   : > { %s2764_s20 = scalar_lea.vmem %s4309_s0, %s2362_s9  ;;  %s2639_s5 = smov 76  }
  0x1f   : > { %v2767_v0 = vld [vmem:[%s2764_s20 + $0x8] sm:$0x3]  ;;  %v2770_v1 = vld [vmem:[%s2764_s20] sm:$0xff]  ;;  %s2640_s6 = smov 68   ;;  %s2641_s7 = smov 72  }
  0x20   : > { %535 = vrot.lane.b32.xlu1 %v2767_v0, %s2633_s21  ;;  %209 = vrot.lane.b32.xlu0 %v2770_v1, %s2633_s21  ;;  %s2642_s8 = smov 120   ;;  %s2643_s9 = smov 124  }
  0x21   : > { %212 = vrot.lane.b32.xlu2 %v2770_v1, %s2634_s24  ;;  %s2644_s10 = smov 116   ;;  %s2645_s11 = smov 88  }
  0x22   : > { %s2646_s21 = smov 92  }
  0x28   : > { %551 = vrot.lane.b32.xlu1 %v2767_v0, %s2635_s27  ;;  %233 = vrot.lane.b32.xlu0 %v2770_v1, %s2635_s27  ;;  %s2648_s27 = smov 64  }
  0x29   : > { %215 = vrot.lane.b32.xlu2 %v2770_v1, %s2636_s28 }
  0x30   : > { %221 = vrot.lane.b32.xlu1 %v2770_v1, %s2637_s29  ;;  %218 = vrot.lane.b32.xlu0 %v2770_v1, %s2638_s4 }
  0x31   : > { %236 = vrot.lane.b32.xlu2 %v2770_v1, %s2639_s5 }
  0x38   : > { %242 = vrot.lane.b32.xlu1 %v2770_v1, %s2640_s6  ;;  %239 = vrot.lane.b32.xlu0 %v2770_v1, %s2641_s7 }
  0x39   : > { %537 = vrot.lane.b32.xlu2 %v2767_v0, %s2634_s24  ;;  %s2647_s24 = smov 84  }
  0x40   : > { %541 = vrot.lane.b32.xlu1 %v2767_v0, %s2638_s4  ;;  %539 = vrot.lane.b32.xlu0 %v2767_v0, %s2636_s28  ;;  %s2649_s28 = smov 60   ;;  %s2653_s4 = smov 4  }
  0x41   : > { %543 = vrot.lane.b32.xlu2 %v2767_v0, %s2637_s29  ;;  %s2652_s29 = smov 8  }
  0x48   : > { %555 = vrot.lane.b32.xlu1 %v2767_v0, %s2641_s7  ;;  %553 = vrot.lane.b32.xlu0 %v2767_v0, %s2639_s5  ;;  %s2655_s7 = smov 28  }
  0x49   : > { %557 = vrot.lane.b32.xlu2 %v2767_v0, %s2640_s6  ;;  %s2654_s6 = smov 12  }
  0x50   : > { %203 = vrot.lane.b32.xlu1 %v2770_v1, %s2642_s8  ;;  %200 = vrot.lane.b32.xlu0 %v2770_v1, %s2643_s9 }
  0x51   : > { %206 = vrot.lane.b32.xlu2 %v2770_v1, %s2644_s10 }
  0x58   : > { %227 = vrot.lane.b32.xlu1 %v2770_v1, %s2645_s11  ;;  %224 = vrot.lane.b32.xlu0 %v2770_v1, %s2646_s21 }
  0x59   : > { %230 = vrot.lane.b32.xlu2 %v2770_v1, %s2647_s24 }
  0x60   : > { %531 = vrot.lane.b32.xlu1 %v2767_v0, %s2642_s8  ;;  %529 = vrot.lane.b32.xlu0 %v2767_v0, %s2643_s9  ;;  %s2657_s8 = smov 20   ;;  %s2658_s9 = smov 36  }
  0x61   : > { %533 = vrot.lane.b32.xlu2 %v2767_v0, %s2644_s10  ;;  %s2659_s10 = smov 16  }
  0x68   : > { %547 = vrot.lane.b32.xlu1 %v2767_v0, %s2645_s11  ;;  %545 = vrot.lane.b32.xlu0 %v2767_v0, %s2646_s21  ;;  %s2662_s11 = smov 40   ;;  %s2663_s21 = smov 32  }
  0x69   : > { %549 = vrot.lane.b32.xlu2 %v2767_v0, %s2647_s24  ;;  %s2664_s24 = smov 52  }
  0x70   : > { %559 = vrot.lane.b32.xlu1 %v2767_v0, %s2648_s27  ;;  %245 = vrot.lane.b32.xlu0 %v2770_v1, %s2648_s27  ;;  %s2665_s27 = smov 56  }
  0x71   : > { %248 = vrot.lane.b32.xlu2 %v2770_v1, %s2649_s28 }
  0x78   : > { %561 = vrot.lane.b32.xlu0 %v2767_v0, %s2649_s28 }
  0x7b   : > { %v213_v2 = vpop.permute.xlu2 %212 }
  0x7c   : > { %v928_v6 = vrot.slane %v213_v2, 2  ;;  %v290_v31 = vrot.slane %v213_v2, 4  ;;  %v579_v47 = vrot.slane %v213_v2, 1 }
  0x83   : > { %v2808_v3 = vpop.permute.xlu2 %215 }
  0x84   : > { %v276_v5 = vrot.slane %v2808_v3, 4  ;;  %v582_v52 = vrot.slane %v2808_v3, 1  ;;  %v931_v54 = vrot.slane %v2808_v3, 2 }
  0x8b   : > { %v2810_v4 = vpop.permute.xlu2 %236 }
  0x8c   : > { %v402_v39 = vrot.slane %v2810_v4, 4 }
  0x92   : > { %v536_v7 = vpop.permute.xlu1 %535  ;;  %v210_v8 = vpop.permute.xlu0 %209 }
  0x93   : > { %v577_v9 = vrot.slane %v536_v7, 1  ;;  %v926_v10 = vrot.slane %v536_v7, 2  ;;  %v2814_v11 = vsel %vm252_vm0, %v276_v5, %v210_v8  ;;  %v278_v12 = vrot.slane %v210_v8, 4  ;;  %v538_v13 = vpop.permute.xlu2 %537 }
  0x94   : > { %v576_v14 = vrot.slane %v210_v8, 1  ;;  %v925_v15 = vrot.slane %v210_v8, 2  ;;  %v929_v17 = vrot.slane %v538_v13, 2  ;;  %v580_v48 = vrot.slane %v538_v13, 1 }
  0x95   : > { %v2818_v16 = vsel %vm252_vm0, %v2808_v3, %v278_v12 }
  0x96   : > { %4343 = vst [vmem:[#allocation5_spill] sm:$0xff] %v2818_v16  ;;  %v2821_v18 = vsel %vm563_vm1, %v576_v14, %v577_v9  ;;  %v2824_v19 = vsel %vm912_vm2, %v925_v15, %v926_v10  ;;  %v930_v20 = vsel %vm912_vm2, %v928_v6, %v929_v17  ;;  %v581_v53 = vsel %vm563_vm1, %v579_v47, %v580_v48 }
  0x97   : > { %v662_v55 = vrot.slane %v2821_v18, 4  ;;  %v1023_v5 = vrot.slane %v930_v20, 4  ;;  %v603_v47 = vrot.slane %v2810_v4, 1 }
  0x9a   : > { %v552_v21 = vpop.permute.xlu1 %551  ;;  %v234_v22 = vpop.permute.xlu0 %233 }
  0x9b   : > { %v601_v23 = vrot.slane %v552_v21, 1  ;;  %v950_v24 = vrot.slane %v552_v21, 2  ;;  %v600_v25 = vrot.slane %v234_v22, 1  ;;  %v949_v26 = vrot.slane %v234_v22, 2  ;;  %v2833_v29 = vpop.permute.xlu2 %543 }
  0x9c   : > { %v938_v30 = vrot.slane %v2833_v29, 2  ;;  %v390_v40 = vrot.slane %v234_v22, 4 }
  0x9d   : > { %v2828_v27 = vsel %vm563_vm1, %v600_v25, %v601_v23  ;;  %v2831_v28 = vsel %vm912_vm2, %v949_v26, %v950_v24  ;;  %v1011_v23 = vrot.slane %v2824_v19, 4 }
  0xa2   : > { %v2836_v32 = vpop.permute.xlu1 %221  ;;  %v219_v33 = vpop.permute.xlu0 %218 }
  0xa3   : > { %v937_v34 = vrot.slane %v2836_v32, 2  ;;  %v288_v35 = vrot.slane %v219_v33, 4  ;;  %v2840_v36 = vsel %vm252_vm0, %v219_v33, %v290_v31  ;;  %v558_v51 = vpop.permute.xlu2 %557  ;;  %v585_v56 = vrot.slane %v219_v33, 1 }
  0xa4   : > { %4344 = vst [vmem:[#allocation6_spill] sm:$0xff] %v2840_v36  ;;  %v934_v57 = vrot.slane %v219_v33, 2  ;;  %v610_v7 = vrot.slane %v558_v51, 1 }
  0xa5   : > { %v2843_v37 = vsel %vm252_vm0, %v288_v35, %v213_v2  ;;  %v2846_v38 = vsel %vm912_vm2, %v937_v34, %v938_v30  ;;  %v674_v2 = vrot.slane %v581_v53, 4  ;;  %v2650_v30 = vmov 1983009808  }
  0xa6   : > { %v257_v31 = vunpack.c.l.s4 %v2650_v30  ;;  %v959_v34 = vrot.slane %v558_v51, 2 }
  0xaa   : > { %v2849_v41 = vpop.permute.xlu1 %242  ;;  %v2851_v42 = vpop.permute.xlu0 %239 }
  0xab   : > { %v400_v43 = vrot.slane %v2849_v41, 4  ;;  %v2856_v44 = vsel %vm252_vm0, %v2849_v41, %v402_v39  ;;  %v388_v45 = vrot.slane %v2851_v42, 4  ;;  %v2861_v46 = vsel %vm252_vm0, %v2851_v42, %v390_v40 }
  0xac   : > { %v609_v6 = vrot.slane %v2849_v41, 1  ;;  %v958_v33 = vrot.slane %v2849_v41, 2  ;;  %v774_v41 = vrot.slane %v2828_v27, 4  ;;  %v606_v48 = vrot.slane %v2851_v42, 1 }
  0xad   : > { %v2865_v49 = vsel %vm252_vm0, %v400_v43, %v2810_v4  ;;  %v2868_v50 = vsel %vm252_vm0, %v388_v45, %v234_v22  ;;  %v2888_v22 = vpop.permute.xlu2 %206 }
  0xae   : > { %v611_v35 = vsel %vm563_vm1, %v609_v6, %v610_v7 }
  0xb2   : > { %v542_v58 = vpop.permute.xlu1 %541  ;;  %v540_v59 = vpop.permute.xlu0 %539 }
  0xb3   : > { %v586_v60 = vrot.slane %v542_v58, 1  ;;  %v935_v61 = vrot.slane %v542_v58, 2  ;;  %v583_v62 = vrot.slane %v540_v59, 1  ;;  %v932_v63 = vrot.slane %v540_v59, 2 }
  0xb5   : > { %v587_v8 = vsel %vm563_vm1, %v585_v56, %v586_v60  ;;  %v936_v9 = vsel %vm912_vm2, %v934_v57, %v935_v61  ;;  %v584_v3 = vsel %vm563_vm1, %v582_v52, %v583_v62  ;;  %v933_v10 = vsel %vm912_vm2, %v931_v54, %v932_v63 }
  0xb6   : > { %v672_v12 = vrot.slane %v587_v8, 4  ;;  %v2880_v13 = vsel %vm252_vm0, %v587_v8, %v674_v2  ;;  %v1021_v14 = vrot.slane %v936_v9, 4  ;;  %v2883_v15 = vsel %vm252_vm0, %v936_v9, %v1023_v5 }
  0xb7   : > { %v660_v17 = vrot.slane %v584_v3, 4  ;;  %v2886_v21 = vsel %vm252_vm0, %v584_v3, %v662_v55  ;;  %v1009_v26 = vrot.slane %v933_v10, 4  ;;  %v2908_v43 = vsel %vm252_vm0, %v933_v10, %v1011_v23  ;;  %v2941_v10 = vpop.permute.xlu2 %230 }
  0xb8   : > { %v2892_v24 = vsel %vm252_vm0, %v672_v12, %v581_v53  ;;  %v2895_v25 = vsel %vm252_vm0, %v1021_v14, %v930_v20  ;;  %v1123_v52 = vrot.slane %v2831_v28, 4  ;;  %v960_v55 = vsel %vm912_vm2, %v958_v33, %v959_v34 }
  0xb9   : > { %v2901_v39 = vsel %vm252_vm0, %v660_v17, %v2821_v18  ;;  %v2905_v40 = vsel %vm252_vm0, %v1009_v26, %v2824_v19  ;;  %v955_v18 = vrot.slane %v2851_v42, 2  ;;  %v784_v19 = vrot.slane %v611_v35, 4 }
  0xba   : > { %v556_v20 = vpop.permute.xlu1 %555  ;;  %v554_v45 = vpop.permute.xlu0 %553  ;;  %v952_v62 = vrot.slane %v2810_v4, 2  ;;  %v2929_v5 = vunpack.c.0.s8 %v257_v31  ;;  %v1133_v8 = vrot.slane %v960_v55, 4  ;;  %v264_v4 = vrot.slane %v2888_v22, 4 }
  0xbb   : > { %v607_v51 = vrot.slane %v556_v20, 1  ;;  %v956_v53 = vrot.slane %v556_v20, 2  ;;  %v604_v54 = vrot.slane %v554_v45, 1  ;;  %v953_v57 = vrot.slane %v554_v45, 2 }
  0xbc   : > { %v589_v23 = vrot.slane %v2833_v29, 1  ;;  %v2955_v30 = vperm.slane %v2814_v11, %v2929_v5  ;;  %v2651_v34 = vmov 1934713408   ;;  %v2966_v20 = vperm.slane %v2843_v37, %v2929_v5 }
  0xbd   : > { %v608_v56 = vsel %vm563_vm1, %v606_v48, %v607_v51  ;;  %v957_v60 = vsel %vm912_vm2, %v955_v18, %v956_v53  ;;  %v605_v61 = vsel %vm563_vm1, %v603_v47, %v604_v54  ;;  %v954_v3 = vsel %vm912_vm2, %v952_v62, %v953_v57 }
  0xbe   : > { %v772_v58 = vrot.slane %v608_v56, 4  ;;  %v2918_v59 = vsel %vm252_vm0, %v608_v56, %v774_v41  ;;  %v1121_v63 = vrot.slane %v957_v60, 4  ;;  %v2924_v42 = vsel %vm252_vm0, %v957_v60, %v1123_v52  ;;  %4346 = vst [vmem:[#allocation8_spill] sm:$0xff] %v2955_v30 }
  0xbf   : > { %v2927_v2 = vsel %vm252_vm0, %v784_v19, %v605_v61  ;;  %v786_v7 = vrot.slane %v605_v61, 4  ;;  %v1135_v26 = vrot.slane %v954_v3, 4  ;;  %4347 = vst [vmem:[#allocation9_spill] sm:$0xff] %v2966_v20  ;;  %v2974_v11 = vperm.slane %v2861_v46, %v2929_v5  ;;  %v534_v60 = vpop.permute.xlu2 %533 }
  0xc0   : > { %v2933_v6 = vsel %vm252_vm0, %v772_v58, %v2828_v27  ;;  %v2937_v9 = vsel %vm252_vm0, %v1121_v63, %v2831_v28  ;;  %v588_v27 = vrot.slane %v2836_v32, 1  ;;  %v1134_v28 = vsel %vm252_vm0, %v1133_v8, %v954_v3 }
  0xc1   : > { %v2944_v12 = vsel %vm252_vm0, %v611_v35, %v786_v7  ;;  %v2958_v31 = vsel %vm252_vm0, %v960_v55, %v1135_v26  ;;  %v305_v35 = vunpack.c.l.s4 %v2651_v34  ;;  %4348 = vst [vmem:[#allocation10_spill] sm:$0xff] %v2974_v11  ;;  %v376_v47 = vrot.slane %v2941_v10, 4 }
  0xc2   : > { %v2946_v14 = vpop.permute.xlu1 %203  ;;  %v2948_v17 = vpop.permute.xlu0 %200  ;;  %v2970_v45 = vsel %vm563_vm1, %v588_v27, %v589_v23  ;;  %v366_v37 = vrot.slane %v2836_v32, 4  ;;  %v2985_v51 = vperm.slane %v2865_v49, %v2929_v5  ;;  %v2994_v54 = vperm.slane %v2868_v50, %v2929_v5 }
  0xc3   : > { %4345 = vst [vmem:[#allocation7_spill] sm:$0xff] %v2946_v14  ;;  %v2962_v33 = vsel %vm252_vm0, %v264_v4, %v2948_v17  ;;  %v266_v29 = vrot.slane %v2948_v17, 4  ;;  %v2987_v52 = vunpack.c.0.s8 %v305_v35  ;;  %v3002_v49 = vperm.slane %v2856_v44, %v2929_v5 }
  0xc4   : > { %4350 = vst [vmem:[#allocation12_spill] sm:$0xff] %v2985_v51  ;;  %v565_v62 = vrot.slane %v2767_v0, 1  ;;  %v564_v63 = vrot.slane %v2770_v1, 1  ;;  %v3018_v7 = vperm.slane %v2880_v13, %v2929_v5  ;;  %v573_v8 = vrot.slane %v2888_v22, 1 }
  0xc5   : > { %v2979_v41 = vsel %vm252_vm0, %v2888_v22, %v266_v29  ;;  %4351 = vst [vmem:[#allocation13_spill] sm:$0xff] %v2994_v54  ;;  %v3028_v27 = vperm.slane %v2886_v21, %v2929_v5  ;;  %v922_v23 = vrot.slane %v2888_v22, 2  ;;  %v3037_v13 = vperm.slane %v2908_v43, %v2929_v5 }
  0xc6   : > { %4349 = vst [vmem:[#allocation11_spill] sm:$0xff] %v2979_v41  ;;  %v597_v34 = vrot.slane %v2941_v10, 1  ;;  %v914_v35 = vrot.slane %v2767_v0, 2  ;;  %v3044_v21 = vperm.slane %v2892_v24, %v2929_v5  ;;  %v3048_v22 = vperm.slane %v2883_v15, %v2929_v5 }
  0xc7   : > { %4352 = vst [vmem:[#allocation14_spill] sm:$0xff] %v3002_v49  ;;  %v3052_v29 = vperm.slane %v2918_v59, %v2929_v5  ;;  %v3055_v43 = vsel %vm563_vm1, %v564_v63, %v565_v62  ;;  %v3060_v0 = vperm.slane %v2895_v25, %v2929_v5  ;;  %v251_v24 = vrot.slane %v2946_v14, 4 }
  0xc8   : > { %4354 = vst [vmem:[#allocation16_spill] sm:$0xff] %v3018_v7  ;;  %v3065_v15 = vperm.slane %v2901_v39, %v2929_v5  ;;  %v3070_v59 = vperm.slane %v2927_v2, %v2929_v5  ;;  %v3078_v25 = vperm.slane %v2905_v40, %v2929_v5  ;;  %v3082_v39 = vperm.slane %v1134_v28, %v2929_v5 }
  0xc9   : > { %v638_v48 = vrot.slane %v3055_v43, 4  ;;  %v3087_v2 = vperm.slane %v2933_v6, %v2929_v5  ;;  %v3092_v3 = vperm.slane %v2937_v9, %v2929_v5  ;;  %v3096_v40 = vperm.slane %v2924_v42, %v2929_v5  ;;  %v550_v6 = vpop.permute.xlu2 %549 }
  0xca   : > { %v2996_v19 = vpop.permute.xlu1 %227  ;;  %v2998_v55 = vpop.permute.xlu0 %224  ;;  %v253_v28 = vsel %vm252_vm0, %v251_v24, %v2770_v1  ;;  %v570_v42 = vrot.slane %v2946_v14, 1  ;;  %v913_v53 = vrot.slane %v2770_v1, 2  ;;  %v598_v46 = vrot.slane %v550_v6, 1 }
  0xcb   : > { %v364_v57 = vrot.slane %v2996_v19, 4  ;;  %v367_v58 = vsel %vm252_vm0, %v2996_v19, %v366_v37  ;;  %v3010_v50 = vsel %vm252_vm0, %v376_v47, %v2998_v55  ;;  %v378_v61 = vrot.slane %v2998_v55, 4 }
  0xcc   : > { %4353 = vst [vmem:[#allocation15_spill] sm:$0xff] %v3010_v50  ;;  %v3107_v47 = vperm.slane %v2944_v12, %v2929_v5  ;;  %v3119_v37 = vperm.slane %v253_v28, %v2929_v5  ;;  %v916_v12 = vrot.slane %v2948_v17, 2  ;;  %v3129_v36 = vperm.slane %v367_v58, %v2929_v5 }
  0xcd   : > { %v3023_v4 = vsel %vm252_vm0, %v364_v57, %v2836_v32  ;;  %v3033_v26 = vsel %vm252_vm0, %v2941_v10, %v378_v61  ;;  %v946_v32 = vrot.slane %v2941_v10, 2  ;;  %v574_v10 = vrot.slane %v534_v60, 1 }
  0xce   : > { %4355 = vst [vmem:[#allocation17_spill] sm:$0xff] %v3023_v4  ;;  %v923_v57 = vrot.slane %v534_v60, 2  ;;  %v834_v60 = vrot.slane %v3052_v29, 4  ;;  %v594_v1 = vrot.slane %v2996_v19, 1  ;;  %v943_v28 = vrot.slane %v2996_v19, 2 }
  0xcf   : > { %4356 = vst [vmem:[#allocation18_spill] sm:$0xff] %v3033_v26  ;;  %v3101_v44 = vsel %vm563_vm1, %v573_v8, %v574_v10  ;;  %v919_v8 = vrot.slane %v2946_v14, 2  ;;  %v567_v10 = vrot.slane %v2948_v17, 1  ;;  %v591_v41 = vrot.slane %v2998_v55, 1 }
  0xd0   : > { %v3112_v63 = vsel %vm912_vm2, %v922_v23, %v923_v57  ;;  %v648_v9 = vrot.slane %v3101_v44, 4  ;;  %v947_v57 = vrot.slane %v550_v6, 2  ;;  %v835_v14 = vsel %vm252_vm0, %v3107_v47, %v834_v60 }
  0xd1   : > { %v940_v58 = vrot.slane %v2998_v55, 2  ;;  %v599_v19 = vsel %vm563_vm1, %v597_v34, %v598_v46  ;;  %v4357_v51 = vrot.slane %v2970_v45, 4  ;;  %v3161_v46 = vperm.slane %v835_v14, %v2987_v52 }
  0xd2   : > { %v3072_v61 = vpop.permute.xlu1 %531  ;;  %v3074_v62 = vpop.permute.xlu0 %529  ;;  %v3148_v60 = vsel %vm912_vm2, %v946_v32, %v947_v57  ;;  %v760_v32 = vrot.slane %v599_v19, 4 }
  0xd3   : > { %v571_v18 = vrot.slane %v3072_v61, 1  ;;  %v568_v56 = vrot.slane %v3074_v62, 1  ;;  %v920_v4 = vrot.slane %v3072_v61, 2  ;;  %v917_v55 = vrot.slane %v3074_v62, 2  ;;  %v3169_v57 = vpop.permute.xlu2 %248 }
  0xd4   : > { %4359 = vst [vmem:[#allocation20_spill] sm:$0xff] %v3169_v57  ;;  %v1109_v62 = vrot.slane %v3148_v60, 4  ;;  %v964_v14 = vrot.slane %v3169_v57, 2 }
  0xd5   : > { %v3125_v23 = vsel %vm563_vm1, %v570_v42, %v571_v18  ;;  %v569_v24 = vsel %vm563_vm1, %v567_v10, %v568_v56  ;;  %v3139_v18 = vsel %vm912_vm2, %v913_v53, %v914_v35  ;;  %v918_v54 = vsel %vm912_vm2, %v916_v12, %v917_v55 }
  0xd6   : > { %v639_v42 = vsel %vm252_vm0, %v3125_v23, %v638_v48  ;;  %v650_v10 = vrot.slane %v569_v24, 4  ;;  %v987_v35 = vrot.slane %v3139_v18, 4  ;;  %v999_v26 = vrot.slane %v918_v54, 4 }
  0xd7   : > { %v3164_v34 = vperm.slane %v639_v42, %v2929_v5 }
  0xda   : > { %v548_v16 = vpop.permute.xlu1 %547  ;;  %v3133_v17 = vpop.permute.xlu0 %545 }
  0xdb   : > { %v595_v6 = vrot.slane %v548_v16, 1  ;;  %v592_v56 = vrot.slane %v3133_v17, 1  ;;  %v944_v42 = vrot.slane %v548_v16, 2  ;;  %v698_v16 = vrot.slane %v3164_v34, 4 }
  0xdd   : > { %v3151_v50 = vsel %vm563_vm1, %v594_v1, %v595_v6  ;;  %v593_v53 = vsel %vm563_vm1, %v591_v41, %v592_v56  ;;  %v651_v1 = vsel %vm252_vm0, %v3101_v44, %v650_v10  ;;  %v3177_v6 = vsel %vm912_vm2, %v919_v8, %v920_v4 }
  0xde   : > { %v751_v48 = vsel %vm252_vm0, %v3151_v50, %v4357_v51  ;;  %v762_v41 = vrot.slane %v593_v53, 4  ;;  %v615_v51 = vrot.slane %v3169_v57, 1  ;;  %v856_v44 = vrot.slane %v3161_v46, 4 }
  0xdf   : > { %v3167_v61 = vperm.slane %v751_v48, %v2929_v5  ;;  %v4361_v10 = vrot.slane %v3028_v27, 4  ;;  %v636_v8 = vrot.slane %v3125_v23, 4  ;;  %v988_v55 = vsel %vm252_vm0, %v3177_v6, %v987_v35 }
  0xe0   : > { %v763_v48 = vsel %vm252_vm0, %v599_v19, %v762_v41  ;;  %v3195_v19 = vperm.slane %v651_v1, %v2929_v5  ;;  %v3202_v11 = vsel %vm912_vm2, %v943_v28, %v944_v42  ;;  %v941_v23 = vrot.slane %v3133_v17, 2 }
  0xe1   : > { %4358 = vst [vmem:[#allocation19_spill] sm:$0xff] %v3167_v61  ;;  %v810_v56 = vrot.slane %v3167_v61, 4  ;;  %v3185_v49 = vperm.slane %v763_v48, %v2929_v5  ;;  %v723_v4 = vsel %vm252_vm0, %v3018_v7, %v4361_v10  ;;  %v761_v10 = vsel %vm252_vm0, %v760_v32, %v593_v53 }
  0xe2   : > { %v560_v20 = vpop.permute.xlu1 %559  ;;  %v3182_v30 = vpop.permute.xlu0 %245  ;;  %v649_v61 = vsel %vm252_vm0, %v648_v9, %v569_v24  ;;  %v699_v28 = vsel %vm252_vm0, %v3195_v19, %v698_v16  ;;  %v3217_v53 = vperm.slane %v723_v4, %v2987_v52  ;;  %v1097_v17 = vrot.slane %v3202_v11, 4 }
  0xe3   : > { %4360 = vst [vmem:[#allocation21_spill] sm:$0xff] %v3182_v30  ;;  %v962_v12 = vrot.slane %v560_v20, 2  ;;  %v613_v41 = vrot.slane %v560_v20, 1  ;;  %v612_v48 = vrot.slane %v3182_v30, 1  ;;  %v961_v57 = vrot.slane %v3182_v30, 2 }
  0xe4   : > { %v811_v1 = vsel %vm252_vm0, %v3185_v49, %v810_v56  ;;  %v748_v30 = vrot.slane %v3151_v50, 4  ;;  %v3221_v32 = vperm.slane %v761_v10, %v2929_v5  ;;  %v3230_v50 = vsel %vm252_vm0, %v636_v8, %v3055_v43 }
  0xe5   : > { %v963_v35 = vsel %vm912_vm2, %v961_v57, %v962_v12  ;;  %v3211_v20 = vperm.slane %v811_v1, %v2987_v52  ;;  %v614_v9 = vsel %vm563_vm1, %v612_v48, %v613_v41  ;;  %v3233_v57 = vperm.slane %v988_v55, %v2929_v5 }
  0xe6   : > { %v1209_v7 = vrot.slane %v963_v35, 4  ;;  %v3236_v56 = vperm.slane %v649_v61, %v2929_v5  ;;  %v3239_v42 = vsel %vm912_vm2, %v940_v58, %v941_v23  ;;  %v4363_v4 = vrot.slane %v3112_v63, 4 }
  0xe7   : > { %v3226_v24 = vsel %vm252_vm0, %v856_v44, %v3211_v20  ;;  %v1000_v44 = vsel %vm252_vm0, %v3112_v63, %v999_v26  ;;  %v3250_v8 = vperm.slane %v699_v28, %v2987_v52  ;;  %v860_v55 = vrot.slane %v614_v9, 4 }
  0xe8   : > { %4362 = vst [vmem:[#allocation22_spill] sm:$0xff] %v3236_v56  ;;  %v3244_v16 = vsel %vm252_vm0, %v4363_v4, %v918_v54  ;;  %v1210_v43 = vsel %vm252_vm0, 0.0, %v1209_v7  ;;  %v708_v58 = vrot.slane %v3044_v21, 4  ;;  %v749_v48 = vsel %vm252_vm0, %v748_v30, %v2970_v45 }
  0xe9   : > { %v1098_v54 = vsel %vm252_vm0, %v1097_v17, %v2846_v38  ;;  %v796_v10 = vrot.slane %v3221_v32, 4  ;;  %v1110_v26 = vsel %vm252_vm0, %v1109_v62, %v3239_v42  ;;  %v3263_v23 = vperm.slane %v1210_v43, %v2929_v5 }
  0xea   : > { %v562_v12 = vpop.permute.xlu0 %561  ;;  %v3267_v1 = vsel %vm252_vm0, %v708_v58, %v3065_v15  ;;  %v3276_v62 = vperm.slane %v1110_v26, %v2929_v5  ;;  %v3283_v4 = vperm.slane %v749_v48, %v2929_v5 }
  0xeb   : > { %v616_v61 = vrot.slane %v562_v12, 1  ;;  %v965_v41 = vrot.slane %v562_v12, 2  ;;  %4364 = vst [vmem:[#allocation23_spill] sm:$0xff] %v3263_v23 }
  0xed   : > { %v617_v7 = vsel %vm563_vm1, %v615_v51, %v616_v61  ;;  %v966_v63 = vsel %vm912_vm2, %v964_v14, %v965_v41  ;;  %v3279_v51 = vperm.slane %v963_v35, %v2929_v5  ;;  %v861_v14 = vsel %vm252_vm0, 0.0, %v860_v55 }
  0xee   : > { %v870_v30 = vrot.slane %v617_v7, 4  ;;  %v3270_v45 = vperm.slane %v617_v7, %v2929_v5  ;;  %v1219_v28 = vrot.slane %v966_v63, 4  ;;  %v3273_v17 = vperm.slane %v966_v63, %v2929_v5 }
  0xef   : > { %v3289_v41 = vperm.slane %v614_v9, %v2929_v5  ;;  %v1243_v35 = vrot.slane %v3263_v23, 4  ;;  %v797_v55 = vsel %vm252_vm0, %v796_v10, %v3283_v4  ;;  %v3303_v63 = vperm.slane %v861_v14, %v2929_v5 }
  0xf0   : > { %4365 = vst [vmem:[#allocation24_spill] sm:$0xff] %v3270_v45  ;;  %v880_v12 = vrot.slane %v3270_v45, 4  ;;  %v1220_v43 = vsel %vm252_vm0, 0.0, %v1219_v28  ;;  %v1229_v61 = vrot.slane %v3273_v17, 4  ;;  %v871_v58 = vsel %vm252_vm0, 0.0, %v870_v30 }
  0xf1   : > { %4366 = vst [vmem:[#allocation25_spill] sm:$0xff] %v3273_v17  ;;  %v3293_v26 = vperm.slane %v1220_v43, %v2929_v5  ;;  %v4369_v9 = vrot.slane %v3070_v59, 4  ;;  %v1145_v28 = vrot.slane %v3276_v62, 4  ;;  %v3322_v14 = vperm.slane %v871_v58, %v2929_v5 }
  0xf2   : > { %v1230_v48 = vsel %vm252_vm0, %v1229_v61, %v3279_v51  ;;  %v881_v7 = vsel %vm252_vm0, %v880_v12, %v3289_v41  ;;  %4368 = vst [vmem:[#allocation27_spill] sm:$0xff] %v3303_v63  ;;  %v803_v23 = vperm.slane %v797_v55, %v2987_v52  ;;  %v1047_v45 = vrot.slane %v3233_v57, 4 }
  0xf3   : > { %4367 = vst [vmem:[#allocation26_spill] sm:$0xff] %v3293_v26  ;;  %v821_v30 = vsel %vm252_vm0, %v4369_v9, %v3087_v2  ;;  %v3311_v43 = vperm.slane %v1230_v48, %v2987_v52  ;;  %v3314_v10 = vperm.slane %v881_v7, %v2987_v52  ;;  %v1244_v61 = vsel %vm252_vm0, %v3293_v26, %v1243_v35 }
  0xf4   : > { %v3319_v12 = vperm.slane %v1244_v61, %v2987_v52  ;;  %4373 = vst [vmem:[#allocation31_spill] sm:$0xff] %v3322_v14  ;;  %v827_v9 = vperm.slane %v821_v30, %v2987_v52  ;;  %v684_v48 = vrot.slane %v3236_v56, 4  ;;  %v3333_v35 = vperm.slane %v1098_v54, %v2929_v5 }
  0xf5   : > { %4370 = vst [vmem:[#allocation28_spill] sm:$0xff] %v3311_v43  ;;  %1385 = vrot.lane.b32.xlu0 %v3311_v43, %s2652_s29  ;;  %1289 = vrot.lane.b32.xlu2 %v3314_v10, %s2653_s4  ;;  %v4374_v58 = vrot.slane %v3082_v39, 4  ;;  %v894_v7 = vrot.slane %v3303_v63, 4  ;;  %v858_v26 = vrot.slane %v3211_v20, 4  ;;  %v4375_v56 = vrot.slane %v2846_v38, 4 }
  0xf6   : > { %4371 = vst [vmem:[#allocation29_spill] sm:$0xff] %v3314_v10  ;;  %1421 = vrot.lane.b32.xlu1 %v3319_v12, %s2652_s29  ;;  %v844_v30 = vrot.slane %v827_v9, 4  ;;  %v746_v10 = vrot.slane %v3250_v8, 4  ;;  %v822_v43 = vrot.slane %v3087_v2, 4 }
  0xf7   : > { %4372 = vst [vmem:[#allocation30_spill] sm:$0xff] %v3319_v12  ;;  %v1170_v55 = vsel %vm252_vm0, %v4374_v58, %v3092_v3  ;;  %v1100_v54 = vsel %vm252_vm0, %v3202_v11, %v4375_v56  ;;  %v1008_v58 = vperm.slane %v1000_v44, %v2929_v5  ;;  %v1146_v12 = vsel %vm252_vm0, %v1145_v28, %v3333_v35 }
  0xf8   : > { %v3343_v61 = vperm.slane %v1170_v55, %v2987_v52  ;;  %v895_v63 = vsel %vm252_vm0, %v3322_v14, %v894_v7  ;;  %v3357_v55 = vsel %vm252_vm0, %v844_v30, %v803_v23  ;;  %v3360_v20 = vperm.slane %v1146_v12, %v2987_v52 }
  0xf9   : > { %v4376_v11 = vrot.slane %v3037_v13, 4  ;;  %v3369_v44 = vperm.slane %v3230_v50, %v2929_v5  ;;  %v3373_v28 = vsel %vm252_vm0, %v3161_v46, %v858_v26  ;;  %v1057_v7 = vrot.slane %v3060_v0, 4 }
  0xfa   : > { %v1193_v38 = vrot.slane %v3343_v61, 4  ;;  %v846_v30 = vrot.slane %v803_v23, 4  ;;  %v1059_v14 = vrot.slane %v3078_v25, 4  ;;  %v1111_v50 = vrot.slane %v3239_v42, 4 }
  0xfb   : > { %v1072_v56 = vsel %vm252_vm0, %v3048_v22, %v4376_v11  ;;  %v3383_v11 = vperm.slane %v1100_v54, %v2929_v5  ;;  %v3387_v17 = vperm.slane %v895_v63, %v2987_v52  ;;  %v3391_v46 = vsel %vm252_vm0, %v1057_v7, %v3078_v25 }
  0xfc   : > { %v3378_v12 = vsel %vm252_vm0, %v1193_v38, %v3360_v20  ;;  %v747_v26 = vsel %vm252_vm0, %v3217_v53, %v746_v10  ;;  %v1048_v23 = vsel %vm252_vm0, %v1008_v58, %v1047_v45  ;;  %v3397_v38 = vperm.slane %v1072_v56, %v2987_v52 }
  0xfd   : > { %v3400_v2 = vsel %vm252_vm0, %v827_v9, %v846_v30  ;;  %v1069_v42 = vrot.slane %v3048_v22, 4  ;;  %1323 = vrot.lane.b32.xlu2 %v3226_v24, %s2653_s4  ;;  %1325 = vrot.lane.b32.xlu0 %v3387_v17, %s2653_s4  ;;  %v685_v25 = vsel %vm252_vm0, %v684_v48, %v3369_v44  ;;  %v3411_v45 = vsel %vm252_vm0, %v3060_v0, %v1059_v14 }
  0xfe   : > { %v823_v63 = vsel %vm252_vm0, %v3070_v59, %v822_v43  ;;  %v1183_v10 = vrot.slane %v3096_v40, 4  ;;  %v3418_v22 = vperm.slane %v2958_v31, %v2929_v5  ;;  %v3422_v24 = vperm.slane %v2962_v33, %v2929_v5  ;;  %1327 = vrot.lane.b32.xlu1 %v747_v26, %s2653_s4 }
  0xff   : > { %v3427_v9 = vperm.slane %v3267_v1, %v2987_v52  ;;  %v302_v0 = vrot.slane %v3119_v37, 4  ;;  %v426_v59 = vrot.slane %v3129_v36, 4  ;;  %v1112_v43 = vsel %vm252_vm0, %v3148_v60, %v1111_v50 }
 0x100   : > { %v3434_v31 = vperm.slane %v1048_v23, %v2987_v52  ;;  %v985_v14 = vrot.slane %v3177_v6, 4  ;;  %v3439_v33 = vperm.slane %v3244_v16, %v2929_v5  ;;  %v1159_v48 = vrot.slane %v3383_v11, 4 }
 0x101   : > { %v3443_v1 = vperm.slane %v685_v25, %v2987_v52  ;;  %v1093_v54 = vrot.slane %v3397_v38, 4  ;;  %v744_v56 = vrot.slane %v3217_v53, 4  ;;  %v710_v60 = vrot.slane %v3065_v15, 4 }
 0x102   : > { %v1171_v7 = vrot.slane %v3092_v3, 4  ;;  %v732_v30 = vrot.slane %v3427_v9, 4  ;;  %v3451_v6 = vperm.slane %v1112_v43, %v2929_v5  ;;  %v1045_v16 = vrot.slane %v1008_v58, 4 }
 0x103   : > { %v1070_v50 = vsel %vm252_vm0, %v1069_v42, %v3037_v13  ;;  %v1094_v26 = vsel %vm252_vm0, %v1093_v54, %v3434_v31  ;;  %v831_v23 = vperm.slane %v823_v63, %v2987_v52  ;;  %v3460_v53 = vsel %vm252_vm0, %v3044_v21, %v710_v60 }
 0x104   : > { %v1172_v3 = vsel %vm252_vm0, %v3082_v39, %v1171_v7  ;;  %v733_v15 = vsel %vm252_vm0, %v732_v30, %v3443_v1  ;;  %v1184_v58 = vsel %vm252_vm0, %v3418_v22, %v1183_v10  ;;  %v1195_v13 = vrot.slane %v3360_v20, 4 }
 0x105   : > { %v798_v42 = vrot.slane %v3283_v4, 4  ;;  %1417 = vrot.lane.b32.xlu0 %v1094_v26, %s2652_s29  ;;  %1285 = vrot.lane.b32.xlu2 %v733_v15, %s2653_s4  ;;  %v745_v21 = vsel %vm252_vm0, %v744_v56, %v3250_v8  ;;  %v1046_v39 = vsel %vm252_vm0, %v1045_v16, %v3233_v57  ;;  %v3477_v25 = vperm.slane %v1070_v50, %v2987_v52  ;;  %v4377_v50 = vld [vmem:[#allocation16_spill] sm:$0xff] }
 0x106   : > { %v832_v63 = vrot.slane %v3107_v47, 4  ;;  %1321 = vrot.lane.b32.xlu1 %v745_v21, %s2653_s4  ;;  %v1160_v4 = vsel %vm252_vm0, %v3451_v6, %v1159_v48  ;;  %v3485_v20 = vsel %vm252_vm0, %v3343_v61, %v1195_v13  ;;  %v696_v10 = vrot.slane %v3195_v19, 4 }
 0x107   : > { %v799_v8 = vsel %vm252_vm0, %v3221_v32, %v798_v42  ;;  %v986_v57 = vsel %vm252_vm0, %v985_v14, %v3139_v18  ;;  %v3493_v43 = vperm.slane %v1184_v58, %v2987_v52  ;;  %v848_v54 = vrot.slane %v831_v23, 4 }
 0x108   : > { %v807_v47 = vperm.slane %v799_v8, %v2987_v52  ;;  %v1033_v48 = vrot.slane %v3439_v33, 4  ;;  %v1180_v56 = vperm.slane %v1172_v3, %v2987_v52  ;;  %v3499_v61 = vperm.slane %v1046_v39, %v2987_v52 }
 0x109   : > { %v1089_v32 = vrot.slane %v3477_v25, 4  ;;  %v3503_v19 = vperm.slane %v1160_v4, %v2987_v52  ;;  %v1147_v14 = vrot.slane %v3333_v35, 4  ;;  %v833_v60 = vsel %vm252_vm0, %v832_v63, %v3052_v29  ;;  %v4379_v35 = vld [vmem:[#allocation18_spill] sm:$0xff] }
 0x10a   : > { %v3506_v18 = vsel %vm252_vm0, %v848_v54, %v807_v47  ;;  %v3512_v7 = vperm.slane %v986_v57, %v2929_v5  ;;  %v697_v16 = vsel %vm252_vm0, %v696_v10, %v3164_v34  ;;  %v4378_v26 = vrot.slane %v4377_v50, 4  ;;  %v4381_v50 = vld [vmem:[#allocation10_spill] sm:$0xff] }
 0x10b   : > { %v3516_v30 = vsel %vm252_vm0, %v1089_v32, %v3499_v61  ;;  %v3526_v15 = vperm.slane %v4379_v35, %v2929_v5  ;;  %v1205_v29 = vrot.slane %v3493_v43, 4  ;;  %v1148_v58 = vsel %vm252_vm0, %v3276_v62, %v1147_v14  ;;  %v4380_v32 = vld [vmem:[#allocation19_spill] sm:$0xff] }
 0x10c   : > { %v721_v3 = vsel %vm252_vm0, %v4378_v26, %v3028_v27  ;;  %v1156_v42 = vperm.slane %v1148_v58, %v2987_v52  ;;  %v1197_v34 = vrot.slane %v1180_v56, 4  ;;  %v3536_v21 = vperm.slane %v833_v60, %v2987_v52  ;;  %v4383_v26 = vld [vmem:[#allocation14_spill] sm:$0xff] }
 0x10d   : > { %v3532_v13 = vperm.slane %v721_v3, %v2987_v52  ;;  %v3539_v27 = vperm.slane %v697_v16, %v2987_v52  ;;  %v300_v39 = vrot.slane %v3422_v24, 4  ;;  %1287 = vrot.lane.b32.xlu0 %v3357_v55, %s2653_s4  ;;  %1383 = vrot.lane.b32.xlu2 %v3378_v12, %s2652_s29  ;;  %v1206_v62 = vsel %vm252_vm0, %v1205_v29, %v3503_v19 }
 0x10e   : > { %v1095_v63 = vrot.slane %v3434_v31, 4  ;;  %v808_v4 = vrot.slane %v3185_v49, 4  ;;  %1419 = vrot.lane.b32.xlu1 %v1206_v62, %s2652_s29  ;;  %v1034_v8 = vsel %vm252_vm0, %v1033_v48, %v3512_v7  ;;  %v3554_v10 = vsel %vm252_vm0, %v1197_v34, %v1156_v42  ;;  %v4385_v34 = vld [vmem:[#allocation9_spill] sm:$0xff] }
 0x10f   : > { %v850_v57 = vrot.slane %v807_v47, 4  ;;  %v740_v55 = vrot.slane %v3532_v13, 4  ;;  %v3559_v12 = vperm.slane %v3391_v46, %v2987_v52  ;;  %v1199_v54 = vrot.slane %v1156_v42, 4  ;;  %v4384_v42 = vld [vmem:[#allocation8_spill] sm:$0xff] }
 0x110   : > { %v809_v31 = vsel %vm252_vm0, %v808_v4, %v4380_v32  ;;  %v427_v49 = vsel %vm252_vm0, %v3526_v15, %v426_v59  ;;  %v852_v14 = vrot.slane %v3536_v21, 4  ;;  %v3579_v60 = vperm.slane %v1034_v8, %v2987_v52 }
 0x111   : > { %v3568_v48 = vsel %vm252_vm0, %v831_v23, %v850_v57  ;;  %v3571_v47 = vperm.slane %v809_v31, %v2987_v52  ;;  %v3576_v46 = vsel %vm252_vm0, %v740_v55, %v3539_v27  ;;  %v3582_v16 = vsel %vm252_vm0, %v1180_v56, %v1199_v54  ;;  %v4388_v55 = vld [vmem:[#allocation12_spill] sm:$0xff] }
 0x112   : > { %v4382_v59 = vrot.slane %v4381_v50, 4  ;;  %v301_v3 = vsel %vm252_vm0, %v300_v39, %v3119_v37  ;;  %v435_v29 = vperm.slane %v427_v49, %v2987_v52  ;;  %v4386_v56 = vrot.slane %v4385_v34, 4  ;;  %v4387_v39 = vld [vmem:[#allocation13_spill] sm:$0xff] }
 0x113   : > { %v3592_v35 = vsel %vm252_vm0, %v852_v14, %v3571_v47  ;;  %v1081_v4 = vrot.slane %v3559_v12, 4  ;;  %v307_v8 = vperm.slane %v301_v3, %v2987_v52  ;;  %v4389_v54 = vrot.slane %v4388_v55, 4 }
 0x114   : > { %v451_v23 = vsel %vm252_vm0, %v4383_v26, %v4382_v59  ;;  %v325_v62 = vsel %vm252_vm0, %v4386_v56, %v4384_v42  ;;  %v1096_v31 = vsel %vm252_vm0, %v3397_v38, %v1095_v63  ;;  %v1231_v49 = vrot.slane %v3279_v51, 4 }
 0x115   : > { %v459_v58 = vperm.slane %v451_v23, %v2987_v52  ;;  %v331_v57 = vperm.slane %v325_v62, %v2987_v52  ;;  %v437_v32 = vsel %vm252_vm0, %v4389_v54, %v4387_v39  ;;  %v882_v14 = vrot.slane %v3289_v41, 4  ;;  %1423 = vrot.lane.b32.xlu0 %v1096_v31, %s2652_s29  ;;  %1329 = vrot.lane.b32.xlu2 %v3373_v28, %s2653_s4  ;;  %v4392_v41 = vld [vmem:[#allocation25_spill] sm:$0xff]  ;;  %v4393_v28 = vld [vmem:[#allocation24_spill] sm:$0xff] }
 0x116   : > { %v1082_v23 = vsel %vm252_vm0, %v1081_v4, %v3579_v60  ;;  %v4390_v56 = vrot.slane %v4387_v39, 4  ;;  %v4391_v38 = vrot.slane %v4384_v42, 4  ;;  %v3627_v63 = vsel %vm252_vm0, %v4392_v41, %v1231_v49 }
 0x117   : > { %v472_v59 = vrot.slane %v459_v58, 4  ;;  %v348_v3 = vrot.slane %v331_v57, 4  ;;  %1381 = vrot.lane.b32.xlu1 %v1082_v23, %s2652_s29  ;;  %v3631_v4 = vsel %vm252_vm0, %v4393_v28, %v882_v14  ;;  %v350_v31 = vrot.slane %v307_v8, 4  ;;  %v4395_v23 = vld [vmem:[#allocation17_spill] sm:$0xff] }
 0x118   : > { %v439_v62 = vsel %vm252_vm0, %v4388_v55, %v4390_v56  ;;  %v327_v51 = vsel %vm252_vm0, %v4385_v34, %v4391_v38  ;;  %v4394_v55 = vld [vmem:[#allocation15_spill] sm:$0xff]  ;;  %v734_v34 = vrot.slane %v3443_v1, 4  ;;  %v371_v49 = vperm.slane %v4395_v23, %v2929_v5 }
 0x119   : > { %v3634_v39 = vsel %vm252_vm0, %v472_v59, %v435_v29  ;;  %v383_v54 = vperm.slane %v4394_v55, %v2929_v5  ;;  %v3639_v42 = vsel %vm252_vm0, %v348_v3, %v307_v8  ;;  %v1207_v56 = vrot.slane %v3503_v19, 4 }
 0x11a   : > { %v303_v14 = vsel %vm252_vm0, %v3422_v24, %v302_v0  ;;  %v448_v59 = vrot.slane %v4383_v26, 4  ;;  %v3651_v38 = vsel %vm252_vm0, %v331_v57, %v350_v31  ;;  %v1181_v41 = vrot.slane %v3418_v22, 4 }
 0x11b   : > { %v412_v3 = vrot.slane %v383_v54, 4  ;;  %v474_v1 = vrot.slane %v435_v29, 4  ;;  %v735_v8 = vsel %vm252_vm0, %v3427_v9, %v734_v34  ;;  %v443_v28 = vperm.slane %v437_v32, %v2987_v52 }
 0x11c   : > { %v311_v19 = vperm.slane %v303_v14, %v2987_v52  ;;  %v335_v37 = vperm.slane %v327_v51, %v2987_v52  ;;  %v414_v55 = vrot.slane %v371_v49, 4  ;;  %v1208_v24 = vsel %vm252_vm0, %v3493_v43, %v1207_v56 }
 0x11d   : > { %1293 = vrot.lane.b32.xlu0 %v3400_v2, %s2653_s4  ;;  %1291 = vrot.lane.b32.xlu2 %v735_v8, %s2653_s4  ;;  %v3665_v22 = vsel %vm252_vm0, %v459_v58, %v474_v1  ;;  %v447_v9 = vperm.slane %v439_v62, %v2987_v52  ;;  %v449_v0 = vsel %vm252_vm0, %v448_v59, %v4381_v50  ;;  %v424_v29 = vrot.slane %v3526_v15, 4 }
 0x11e   : > { %v352_v26 = vrot.slane %v335_v37, 4  ;;  %v910_v2 = vrot.slane %v3387_v17, 4  ;;  %v1182_v57 = vsel %vm252_vm0, %v1181_v41, %v3096_v40  ;;  %v413_v43 = vsel %vm252_vm0, %v412_v3, %v371_v49 }
 0x11f   : > { %1425 = vrot.lane.b32.xlu1 %v1208_v24, %s2652_s29  ;;  %v419_v58 = vperm.slane %v413_v43, %v2987_v52  ;;  %v460_v32 = vrot.slane %v443_v28, 4  ;;  %v354_v51 = vrot.slane %v311_v19, 4  ;;  %v1083_v50 = vrot.slane %v3579_v60, 4 }
 0x120   : > { %v3678_v62 = vsel %vm252_vm0, %v352_v26, %v311_v19  ;;  %v415_v34 = vsel %vm252_vm0, %v383_v54, %v414_v55  ;;  %v464_v31 = vrot.slane %v447_v9, 4  ;;  %v455_v15 = vperm.slane %v449_v0, %v2987_v52 }
 0x121   : > { %v3684_v17 = vsel %vm252_vm0, %v460_v32, %v419_v58  ;;  %v462_v40 = vrot.slane %v419_v58, 4  ;;  %v423_v23 = vperm.slane %v415_v34, %v2987_v52  ;;  %v3688_v49 = vsel %vm252_vm0, %v335_v37, %v354_v51  ;;  %v4396_v37 = vld [vmem:[#allocation28_spill] sm:$0xff] }
 0x122   : > { %v911_v56 = vsel %vm252_vm0, 0.0, %v910_v2  ;;  %v1188_v14 = vperm.slane %v1182_v57, %v2987_v52  ;;  %v1157_v60 = vrot.slane %v3451_v6, 4  ;;  %v1084_v41 = vsel %vm252_vm0, %v3559_v12, %v1083_v50 }
 0x123   : > { %v3694_v54 = vsel %vm252_vm0, %v443_v28, %v462_v40  ;;  %v3697_v59 = vsel %vm252_vm0, %v464_v31, %v423_v23  ;;  %v466_v3 = vrot.slane %v423_v23, 4  ;;  %v425_v1 = vsel %vm252_vm0, %v424_v29, %v3129_v36 }
 0x124   : > { %v1158_v6 = vsel %vm252_vm0, %v1157_v60, %v3383_v11  ;;  %v431_v28 = vperm.slane %v425_v1, %v2987_v52  ;;  %v468_v19 = vrot.slane %v455_v15, 4  ;;  %v1253_v55 = vrot.slane %v4396_v37, 4 }
 0x125   : > { %1331 = vrot.lane.b32.xlu0 %v911_v56, %s2653_s4  ;;  %1389 = vrot.lane.b32.xlu2 %v3485_v20, %s2652_s29  ;;  %v3710_v8 = vsel %vm252_vm0, %v447_v9, %v466_v3  ;;  %v4397_v20 = vld [vmem:[#allocation29_spill] sm:$0xff]  ;;  %v1164_v12 = vperm.slane %v1158_v6, %v2987_v52  ;;  %v1201_v0 = vrot.slane %v1188_v14, 4  ;;  %v1091_v36 = vrot.slane %v3499_v61, 4  ;;  %v4398_v9 = vld [vmem:[#allocation30_spill] sm:$0xff] }
 0x126   : > { %v904_v24 = vrot.slane %v4397_v20, 4  ;;  %v742_v26 = vrot.slane %v3539_v27, 4  ;;  %v3719_v29 = vsel %vm252_vm0, %v468_v19, %v431_v28  ;;  %v470_v11 = vrot.slane %v431_v28, 4 }
 0x127   : > { %1387 = vrot.lane.b32.xlu1 %v1084_v41, %s2652_s29  ;;  %v1259_v2 = vrot.slane %v4398_v9, 4  ;;  %v1035_v57 = vrot.slane %v3512_v7, 4  ;;  %v1202_v43 = vsel %vm252_vm0, %v1201_v0, %v1164_v12  ;;  %v686_v58 = vrot.slane %v3369_v44, 4  ;;  %v4403_v0 = vld [vmem:[#allocation27_spill] sm:$0xff] }
 0x128   : > { %v3727_v32 = vsel %vm252_vm0, %v3477_v25, %v1091_v36  ;;  %v3731_v61 = vsel %vm252_vm0, %v3532_v13, %v742_v26  ;;  %v3734_v27 = vsel %vm252_vm0, %v455_v15, %v470_v11  ;;  %v1254_v51 = vsel %vm252_vm0, 0.0, %v1253_v55  ;;  %v4399_v13 = vld [vmem:[#allocation22_spill] sm:$0xff]  ;;  %v4401_v55 = vld [vmem:[#allocation31_spill] sm:$0xff] }
 0x129   : > { %v905_v50 = vsel %vm252_vm0, 0.0, %v904_v24  ;;  %v1260_v44 = vsel %vm252_vm0, 0.0, %v1259_v2  ;;  %v1036_v25 = vsel %vm252_vm0, %v3439_v33, %v1035_v57  ;;  %v1068_v7 = vperm.slane %v3411_v45, %v2987_v52  ;;  %v2536_v9 = vld [vmem:[%s2764_s20] sm:$0xff]  ;;  %v1504_v57 = vld [vmem:[%s4310_s1 + $0x8] sm:$0xf]  ;;  %s2660_s20 = smov 44  }
 0x12a   : > { %v687_v34 = vsel %vm252_vm0, %v4399_v13, %v686_v58  ;;  %v719_v31 = vperm.slane %v3460_v53, %v2987_v52  ;;  %v1044_v15 = vperm.slane %v1036_v25, %v2987_v52  ;;  %v854_v40 = vrot.slane %v3571_v47, 4  ;;  %2382 = vmatpush.msk.msra.mxu1 %vm1605_vm3, %v1504_v57  ;;  %v3843_v13 = vld [vmem:[%s4310_s1 + $0x20] sm:$0xff] }
 0x12b   : > { %v1203_v23 = vrot.slane %v1164_v12, 4  ;;  %v695_v56 = vperm.slane %v687_v34, %v2987_v52  ;;  %v1085_v60 = vrot.slane %v1068_v7, 4  ;;  %v1240_v47 = vperm.slane %v3627_v63, %v2987_v52  ;;  %v4402_v12 = vld [vmem:[#allocation23_spill] sm:$0xff]  ;;  %v4405_v34 = vld [vmem:[#allocation5_spill] sm:$0xff] }
 0x12c   : > { %v855_v33 = vsel %vm252_vm0, %v3536_v21, %v854_v40  ;;  %v736_v45 = vrot.slane %v719_v31, 4  ;;  %v891_v21 = vperm.slane %v3631_v4, %v2987_v52  ;;  %v892_v20 = vrot.slane %v4401_v55, 4 }
 0x12d   : > { %1391 = vrot.lane.b32.xlu0 %v1254_v51, %s2652_s29  ;;  %1295 = vrot.lane.b32.xlu2 %v905_v50, %s2653_s4  ;;  %v3756_v3 = vsel %vm252_vm0, %v1188_v14, %v1203_v23  ;;  %v1086_v41 = vsel %vm252_vm0, %v1085_v60, %v1044_v15  ;;  %v1087_v14 = vrot.slane %v1044_v15, 4  ;;  %v738_v1 = vrot.slane %v695_v56, 4 }
 0x12e   : > { %v737_v53 = vsel %vm252_vm0, %v736_v45, %v695_v56  ;;  %v1255_v4 = vrot.slane %v1240_v47, 4  ;;  %v906_v6 = vrot.slane %v891_v21, 4  ;;  %v893_v36 = vsel %vm252_vm0, %v892_v20, %v4403_v0  ;;  %v4406_v56 = vld [vmem:[#allocation6_spill] sm:$0xff] }
 0x12f   : > { %1427 = vrot.lane.b32.xlu1 %v1260_v44, %s2652_s29  ;;  %v739_v63 = vsel %vm252_vm0, %v719_v31, %v738_v1  ;;  %v899_v11 = vperm.slane %v893_v36, %v2987_v52  ;;  %v254_v2 = vrot.slane %v2536_v9, 4  ;;  %v3847_v31 = vperm.slane %v4405_v34, %v2929_v5  ;;  %v4409_v1 = vld [vmem:[#allocation20_spill] sm:$0xff] }
 0x130   : > { %v1256_v28 = vsel %vm252_vm0, 0.0, %v1255_v4  ;;  %v907_v19 = vsel %vm252_vm0, 0.0, %v906_v6  ;;  %v3858_v60 = vperm.slane %v4406_v56, %v2929_v5 }
 0x131   : > { %v908_v50 = vrot.slane %v899_v11, 4 }
 0x133   : > { %v909_v23 = vsel %vm252_vm0, 0.0, %v908_v50 }
 0x135   : > { %1393 = vrot.lane.b32.xlu0 %v1086_v41, %s2652_s29  ;;  %1299 = vrot.lane.b32.xlu2 %v3506_v18, %s2653_s4  ;;  %v1088_v18 = vsel %vm252_vm0, %v1068_v7, %v1087_v14  ;;  %v1503_v7 = vld [vmem:[%s4310_s1] sm:$0xff] }
 0x136   : > { %1724 = vmatpush.msra.mxu1 %v1503_v7 }
 0x137   : > { %1297 = vrot.lane.b32.xlu1 %v737_v53, %s2653_s4  ;;  %v338_v53 = vrot.slane %v3847_v31, 4 }
 0x13d   : > { %1397 = vrot.lane.b32.xlu0 %v1240_v47, %s2652_s29  ;;  %1301 = vrot.lane.b32.xlu2 %v891_v21, %s2653_s4  ;;  %v4408_v21 = vld [vmem:[#allocation11_spill] sm:$0xff] }
 0x13e   : > { %v3868_v14 = vperm.slane %v4408_v21, %v2929_v5 }
 0x13f   : > { %1395 = vrot.lane.b32.xlu1 %v3554_v10, %s2652_s29 }
 0x145   : > { %1399 = vrot.lane.b32.xlu0 %v1088_v18, %s2652_s29  ;;  %1305 = vrot.lane.b32.xlu2 %v3568_v48, %s2653_s4  ;;  %v4400_v48 = vld [vmem:[#allocation26_spill] sm:$0xff]  ;;  %v3872_v18 = vperm.slane %v4409_v1, %v2929_v5 }
 0x146   : > { %v1241_v37 = vrot.slane %v4400_v48, 4 }
 0x147   : > { %1303 = vrot.lane.b32.xlu1 %v739_v63, %s2653_s4 }
 0x14d   : > { %1403 = vrot.lane.b32.xlu0 %v1256_v28, %s2652_s29  ;;  %1307 = vrot.lane.b32.xlu2 %v907_v19, %s2653_s4  ;;  %v486_v28 = vrot.slane %v4409_v1, 4  ;;  %v496_v19 = vrot.slane %v3872_v18, 4 }
 0x14f   : > { %1401 = vrot.lane.b32.xlu1 %v3582_v16, %s2652_s29  ;;  %v3784_v10 = vpop.permute.xlu2 %1289  ;;  %v1242_v16 = vsel %vm252_vm0, %v1241_v37, %v4402_v12  ;;  %v487_v0 = vsel %vm252_vm0, 0.0, %v486_v28 }
 0x150   : > { %v1248_v26 = vperm.slane %v1242_v16, %v2987_v52 }
 0x152   : > { %v1257_v51 = vrot.slane %v1248_v26, 4 }
 0x154   : > { %v1258_v40 = vsel %vm252_vm0, 0.0, %v1257_v51 }
 0x155   : > { %1405 = vrot.lane.b32.xlu0 %v3516_v30, %s2652_s29  ;;  %1311 = vrot.lane.b32.xlu2 %v3592_v35, %s2653_s4  ;;  %v2363_v35 = vld [vmem:[%s4310_s1 + $0x10] sm:$0xff] }
 0x157   : > { %1309 = vrot.lane.b32.xlu1 %v3576_v46, %s2653_s4  ;;  %v3794_v24 = vpop.permute.xlu2 %1323  ;;  %v2364_v46 = vld [vmem:[%s4310_s1 + $0x18] sm:$0xf] }
 0x158   : > { %2423 = vmatpush.msk.msra.mxu3 %vm1605_vm3, %v2364_v46  ;;  %2365 = vmatpush.msk.msra.mxu0 %vm1605_vm3, %v2364_v46 }
 0x15a   : > { %2424 = vmatpush.msra.mxu3 %v2363_v35  ;;  %1624 = vmatpush.msra.mxu0 %v2363_v35  ;;  %v3899_v35 = vperm.slane %v487_v0, %v2929_v5 }
 0x15c   : > { %2425 = vmatpush.msk.msrb.mxu3 %vm1605_vm3, %v1504_v57 }
 0x15d   : > { %1409 = vrot.lane.b32.xlu0 %v1248_v26, %s2652_s29  ;;  %1313 = vrot.lane.b32.xlu2 %v899_v11, %s2653_s4 }
 0x15e   : > { %2426 = vmatpush.msrb.mxu3 %v1503_v7 }
 0x15f   : > { %1407 = vrot.lane.b32.xlu1 %v1202_v43, %s2652_s29  ;;  %v3805_v30 = vpop.permute.xlu2 %1285 }
 0x165   : > { %1411 = vrot.lane.b32.xlu0 %v3727_v32, %s2652_s29  ;;  %1317 = vrot.lane.b32.xlu2 %v855_v33, %s2653_s4  ;;  %v4404_v32 = vld [vmem:[#allocation7_spill] sm:$0xff]  ;;  %v4407_v33 = vld [vmem:[#allocation21_spill] sm:$0xff] }
 0x166   : > { %v255_v44 = vsel %vm252_vm0, %v4404_v32, %v254_v2  ;;  %v476_v45 = vrot.slane %v4407_v33, 4  ;;  %v3885_v48 = vperm.slane %v4407_v33, %v2929_v5 }
 0x167   : > { %1315 = vrot.lane.b32.xlu1 %v3731_v61, %s2653_s4  ;;  %v1386_v43 = vpop.permute.xlu0 %1385  ;;  %v1384_v25 = vpop.permute.xlu2 %1383  ;;  %v3836_v61 = vld [vmem:[%s4310_s1 + $0x28] sm:$0xf]  ;;  %v3850_v15 = vperm.slane %v255_v44, %v2929_v5 }
 0x168   : > { %v3825_v58 = vpop.permute.xlu1 %1421  ;;  %2401 = vmatpush.msk.msra.mxu2 %vm1605_vm3, %v3836_v61  ;;  %v477_v4 = vsel %vm252_vm0, 0.0, %v476_v45  ;;  %v497_v36 = vsel %vm252_vm0, %v496_v19, %v3885_v48 }
 0x169   : > { %v314_v47 = vrot.slane %v3850_v15, 4  ;;  %v3890_v55 = vperm.slane %v477_v4, %v2929_v5  ;;  %v3902_v9 = vperm.slane %v497_v36, %v2987_v52 }
 0x16a   : > { %1867 = vmatpush.msra.mxu2 %v3843_v13 }
 0x16b   : > { %v315_v37 = vsel %vm252_vm0, %v3868_v14, %v314_v47  ;;  %v510_v11 = vrot.slane %v3890_v55, 4  ;;  %v1456_v51 = vsel %vm1453_vm4, %v3902_v9, %v3784_v10 }
 0x16c   : > { %v323_v12 = vperm.slane %v315_v37, %v2987_v52  ;;  %v1481_v44 = vsel %vm1478_vm5, %v1456_v51, %v1386_v43 }
 0x16d   : > { %1415 = vrot.lane.b32.xlu0 %v1258_v40, %s2652_s29  ;;  %1319 = vrot.lane.b32.xlu2 %v909_v23, %s2653_s4  ;;  %v511_v50 = vsel %vm252_vm0, %v3899_v35, %v510_v11  ;;  %v1473_v40 = vsel %vm1453_vm4, %v3634_v39, %v3794_v24  ;;  %v1535_v33 = vrot.slane %v1481_v44, 1  ;;  %v1780_v45 = vrot.slane %v1481_v44, 2 }
 0x16e   : > { %v3919_v23 = vperm.slane %v511_v50, %v2987_v52 }
 0x16f   : > { %1413 = vrot.lane.b32.xlu1 %v3756_v3, %s2652_s29  ;;  %v1326_v41 = vpop.permute.xlu0 %1325  ;;  %v339_v3 = vsel %vm252_vm0, %v3858_v60, %v338_v53  ;;  %v3879_v6 = vpop.permute.xlu2 %1329 }
 0x170   : > { %v3874_v63 = vpop.permute.xlu1 %1327  ;;  %v347_v20 = vperm.slane %v339_v3, %v2987_v52  ;;  %v1474_v1 = vsel %vm1453_vm4, %v3919_v23, %v1326_v41  ;;  %v1454_v41 = vsel %vm1453_vm4, %v3639_v42, %v3805_v30 }
 0x172   : > { %v360_v46 = vrot.slane %v347_v20, 4 }
 0x174   : > { %v361_v2 = vsel %vm252_vm0, %v360_v46, %v323_v12 }
 0x177   : > { %v1418_v16 = vpop.permute.xlu0 %1417  ;;  %v1292_v32 = vpop.permute.xlu2 %1291 }
 0x178   : > { %v1322_v26 = vpop.permute.xlu1 %1321 }
 0x179   : > { %v1472_v57 = vsel %vm1453_vm4, %v361_v2, %v1322_v26  ;;  %v1476_v2 = vsel %vm1453_vm4, %v3665_v22, %v3879_v6 }
 0x17a   : > { %v3913_v7 = vsel %vm1478_vm5, %v1472_v57, %v1418_v16  ;;  %v362_v16 = vrot.slane %v323_v12, 4 }
 0x17b   : > { %v1562_v21 = vrot.slane %v3913_v7, 1 }
 0x17c   : > { %v363_v42 = vsel %vm252_vm0, %v347_v20, %v362_v16 }
 0x17d   : > { %v1475_v30 = vsel %vm1453_vm4, %v363_v42, %v3874_v63 }
 0x17f   : > { %v1288_v34 = vpop.permute.xlu0 %1287  ;;  %v1390_v28 = vpop.permute.xlu2 %1389 }
 0x180   : > { %v1455_v10 = vsel %vm1453_vm4, %v3684_v17, %v1288_v34  ;;  %v1420_v56 = vpop.permute.xlu1 %1419 }
 0x181   : > { %v1480_v43 = vsel %vm1478_vm5, %v1455_v10, %v1384_v25  ;;  %v3925_v53 = vsel %vm1478_vm5, %v1473_v40, %v1420_v56  ;;  %v3939_v25 = vsel %vm1478_vm5, %v1474_v1, %v3825_v58  ;;  %v1457_v40 = vsel %vm1453_vm4, %v3651_v38, %v1292_v32 }
 0x182   : > { %v1563_v47 = vrot.slane %v3925_v53, 1  ;;  %v1533_v39 = vrot.slane %v1480_v43, 1  ;;  %v1778_v24 = vrot.slane %v1480_v43, 2  ;;  %v1565_v36 = vrot.slane %v3939_v25, 1 }
 0x183   : > { %v520_v56 = vrot.slane %v3902_v9, 4  ;;  %v1808_v42 = vrot.slane %v3925_v53, 2 }
 0x184   : > { %v1564_v17 = vsel %vm563_vm1, %v1562_v21, %v1563_v47  ;;  %v1536_v4 = vsel %vm563_vm1, %v1533_v39, %v1535_v33  ;;  %v1781_v3 = vsel %vm912_vm2, %v1778_v24, %v1780_v45  ;;  %v1566_v11 = vsel %vm563_vm1, %v1563_v47, %v1565_v36 }
 0x185   : > { %2378 = vmatmul.msk.f32.vlgmr.msra.gmra.mxu3 %vm1572_vm6, %v1564_v17  ;;  %v521_v38 = vsel %vm252_vm0, 0.0, %v520_v56 }
 0x186   : > { %2427 = vmatpush.msk.msra.mxu3 %vm1605_vm3, %v3836_v61  ;;  %vm2253_vm3 = vcmask 523264  }
 0x187   : > { %v1424_v19 = vpop.permute.xlu0 %1423  ;;  %v1296_v51 = vpop.permute.xlu2 %1295 }
 0x188   : > { %2428 = vmatpush.msra.mxu3 %v3843_v13  ;;  %v3958_v13 = vsel %vm1478_vm5, %v1475_v30, %v1424_v19  ;;  %v1459_v9 = vsel %vm1453_vm4, %v521_v38, %v1296_v51 }
 0x189   : > { %v1382_v37 = vpop.permute.xlu1 %1381  ;;  %v1567_v50 = vrot.slane %v3958_v13, 1 }
 0x18a   : > { %v1479_v0 = vsel %vm1478_vm5, %v1454_v41, %v1382_v37 }
 0x18b   : > { %v1532_v26 = vrot.slane %v1479_v0, 1  ;;  %2383 = vmatmul.msk.f32.vlgmr.msra.gmra.mxu1 %vm1572_vm6, %v1479_v0  ;;  %v1777_v61 = vrot.slane %v1479_v0, 2 }
 0x18d   : > { %v1534_v58 = vsel %vm563_vm1, %v1532_v26, %v1533_v39  ;;  %v1779_v46 = vsel %vm912_vm2, %v1777_v61, %v1778_v24  ;;  %2379 = vmatmul.msk.f32.gmra.mxu3 %vm1572_vm6, %v1566_v11  ;;  %v526_v39 = vrot.slane %v3919_v23, 4  ;;  %v498_v61 = vrot.slane %v3885_v48, 4 }
 0x18e   : > { %2366 = vmatmul.msk.f32.vlgmr.msra.gmra.mxu0 %vm1572_vm6, %v1534_v58  ;;  %2402 = vmatmul.msk.f32.vlgmr.msra.gmra.mxu2 %vm1572_vm6, %v1779_v46 }
 0x18f   : > { %v1294_v12 = vpop.permute.xlu0 %1293  ;;  %v1300_v21 = vpop.permute.xlu2 %1299  ;;  %v527_v32 = vsel %vm252_vm0, 0.0, %v526_v39  ;;  %v499_v30 = vsel %vm252_vm0, %v3872_v18, %v498_v61  ;;  %v336_v39 = vrot.slane %v3858_v60, 4 }
 0x190   : > { %v1458_v63 = vsel %vm1453_vm4, %v3694_v54, %v1294_v12  ;;  %v507_v48 = vperm.slane %v499_v30, %v2987_v52  ;;  %v1461_v18 = vsel %vm1453_vm4, %v3697_v59, %v1300_v21 }
 0x191   : > { %v1426_v57 = vpop.permute.xlu1 %1425  ;;  %v1483_v22 = vsel %vm1478_vm5, %v1458_v63, %v1390_v28  ;;  %v337_v60 = vsel %vm252_vm0, %v336_v39, %v3847_v31 }
 0x192   : > { %v3964_v20 = vsel %vm1478_vm5, %v1476_v2, %v1426_v57  ;;  %v1783_v47 = vrot.slane %v1483_v22, 2  ;;  %v1807_v2 = vrot.slane %v3913_v7, 2 }
 0x193   : > { %v1568_v44 = vrot.slane %v3964_v20, 1  ;;  %2384 = vmatmul.msk.f32.gmra.mxu1 %vm1572_vm6, %v1480_v43  ;;  %v1538_v43 = vrot.slane %v1483_v22, 1  ;;  %v1813_v38 = vrot.slane %v3964_v20, 2 }
 0x194   : > { %v4015_v57 = vsel %vm912_vm2, %v1807_v2, %v1808_v42 }
 0x195   : > { %v1569_v34 = vsel %vm563_vm1, %v1567_v50, %v1568_v44 }
 0x196   : > { %2367 = vmatmul.msk.f32.gmra.mxu0 %vm1572_vm6, %v1536_v4  ;;  %2380 = vmatmul.msk.f32.gmra.mxu3 %vm1572_vm6, %v1569_v34 }
 0x197   : > { %2403 = vmatmul.msk.f32.gmra.mxu2 %vm1572_vm6, %v1781_v3  ;;  %v1332_v6 = vpop.permute.xlu0 %1331  ;;  %v1302_v26 = vpop.permute.xlu2 %1301 }
 0x198   : > { %v1477_v4 = vsel %vm1453_vm4, %v527_v32, %v1332_v6 }
 0x199   : > { %v1388_v10 = vpop.permute.xlu1 %1387 }
 0x19a   : > { %v1482_v33 = vsel %vm1478_vm5, %v1457_v40, %v1388_v10 }
 0x19b   : > { %v1537_v54 = vrot.slane %v1482_v33, 1  ;;  %2385 = vmatmul.msk.f32.gmra.mxu1 %vm1572_vm6, %v1482_v33  ;;  %v1782_v45 = vrot.slane %v1482_v33, 2  ;;  %v1810_v33 = vrot.slane %v3939_v25, 2 }
 0x19d   : > { %v1539_v24 = vsel %vm563_vm1, %v1537_v54, %v1538_v43  ;;  %v1784_v1 = vsel %vm912_vm2, %v1782_v45, %v1783_v47 }
 0x19e   : > { %2368 = vmatmul.msk.f32.gmra.mxu0 %vm1572_vm6, %v1539_v24 }
 0x19f   : > { %2404 = vmatmul.msk.f32.gmra.mxu2 %vm1572_vm6, %v1784_v1  ;;  %v1392_v17 = vpop.permute.xlu0 %1391  ;;  %v1306_v51 = vpop.permute.xlu2 %1305 }
 0x1a0   : > { %v1484_v3 = vsel %vm1478_vm5, %v1459_v9, %v1392_v17  ;;  %v522_v9 = vrot.slane %v507_v48, 4  ;;  %v1812_v17 = vrot.slane %v3958_v13, 2 }
 0x1a1   : > { %v1428_v23 = vpop.permute.xlu1 %1427  ;;  %v1540_v28 = vrot.slane %v1484_v3, 1  ;;  %v1785_v19 = vrot.slane %v1484_v3, 2 }
 0x1a2   : > { %v3992_v41 = vsel %vm1478_vm5, %v1477_v4, %v1428_v23  ;;  %v4051_v4 = vsel %vm912_vm2, %v1812_v17, %v1813_v38  ;;  %v1464_v23 = vsel %vm1453_vm4, %v3710_v8, %v1306_v51 }
 0x1a3   : > { %v1570_v37 = vrot.slane %v3992_v41, 1  ;;  %2386 = vmatmul.msk.f32.gmra.mxu1 %vm1572_vm6, %v1483_v22  ;;  %v1541_v16 = vsel %vm563_vm1, %v1538_v43, %v1540_v28  ;;  %v1786_v0 = vsel %vm912_vm2, %v1783_v47, %v1785_v19  ;;  %v4033_v47 = vsel %vm912_vm2, %v1808_v42, %v1810_v33 }
 0x1a5   : > { %v1571_v36 = vsel %vm563_vm1, %v1568_v44, %v1570_v37  ;;  %v1815_v37 = vrot.slane %v3992_v41, 2 }
 0x1a6   : > { %2369 = vmatmul.msk.f32.gmra.mxu0 %vm1572_vm6, %v1541_v16  ;;  %2381 = vmatmul.msk.f32.gmra.mxu3 %vm1572_vm6, %v1571_v36 }
 0x1a7   : > { %2405 = vmatmul.msk.f32.gmra.mxu2 %vm1572_vm6, %v1786_v0  ;;  %v1394_v58 = vpop.permute.xlu0 %1393  ;;  %v1308_v24 = vpop.permute.xlu2 %1307  ;;  %v1816_v2 = vsel %vm912_vm2, %v1813_v38, %v1815_v37 }
 0x1a9   : > { %v1298_v11 = vpop.permute.xlu1 %1297 }
 0x1aa   : > { %v1460_v46 = vsel %vm1453_vm4, %v3678_v62, %v1298_v11  ;;  %v1462_v62 = vsel %vm1453_vm4, %v507_v48, %v1302_v26 }
 0x1ab   : > { %v1485_v12 = vsel %vm1478_vm5, %v1460_v46, %v1394_v58 }
 0x1ac   : > { %2387 = vmatmul.msk.f32.gmra.mxu1 %vm1572_vm6, %v1485_v12  ;;  %v1542_v40 = vrot.slane %v1485_v12, 1  ;;  %v1787_v10 = vrot.slane %v1485_v12, 2 }
 0x1ae   : > { %2395 = vmatmul.msk.f32.vlgmr.msrb.gmra.mxu3 %vm1572_vm6, %v3913_v7 }
 0x1af   : > { %v1398_v50 = vpop.permute.xlu0 %1397  ;;  %v1312_v46 = vpop.permute.xlu2 %1311 }
 0x1b0   : > { %v1487_v44 = vsel %vm1478_vm5, %v1462_v62, %v1398_v50 }
 0x1b1   : > { %v1396_v63 = vpop.permute.xlu1 %1395  ;;  %v1545_v34 = vrot.slane %v1487_v44, 1  ;;  %v1790_v22 = vrot.slane %v1487_v44, 2 }
 0x1b2   : > { %v1486_v6 = vsel %vm1478_vm5, %v1461_v18, %v1396_v63  ;;  %v508_v18 = vrot.slane %v3899_v35, 4 }
 0x1b3   : > { %v1543_v7 = vrot.slane %v1486_v6, 1  ;;  %v1788_v56 = vrot.slane %v1486_v6, 2 }
 0x1b4   : > { %2388 = vmatmul.msk.f32.gmra.mxu1 %vm1572_vm6, %v1486_v6 }
 0x1b5   : > { %v1544_v54 = vsel %vm563_vm1, %v1542_v40, %v1543_v7  ;;  %v1789_v45 = vsel %vm912_vm2, %v1787_v10, %v1788_v56  ;;  %v1546_v59 = vsel %vm563_vm1, %v1543_v7, %v1545_v34  ;;  %v1791_v43 = vsel %vm912_vm2, %v1788_v56, %v1790_v22 }
 0x1b6   : > { %2370 = vmatmul.msk.f32.gmra.mxu0 %vm1572_vm6, %v1544_v54  ;;  %2396 = vmatmul.msk.f32.gmra.mxu3 %vm1572_vm6, %v3925_v53  ;;  %v312_v53 = vrot.slane %v3868_v14, 4  ;;  %v1467_v22 = vsel %vm1453_vm4, %v3719_v29, %v1312_v46 }
 0x1b7   : > { %2406 = vmatmul.msk.f32.gmra.mxu2 %vm1572_vm6, %v1789_v45  ;;  %v1400_v25 = vpop.permute.xlu0 %1399  ;;  %v1314_v63 = vpop.permute.xlu2 %1313 }
 0x1b8   : > { %v313_v31 = vsel %vm252_vm0, %v312_v53, %v3850_v15 }
 0x1b9   : > { %v1304_v21 = vpop.permute.xlu1 %1303  ;;  %v319_v8 = vperm.slane %v313_v31, %v2987_v52 }
 0x1ba   : > { %v1463_v1 = vsel %vm1453_vm4, %v3688_v49, %v1304_v21  ;;  %v523_v49 = vsel %vm252_vm0, 0.0, %v522_v9 }
 0x1bb   : > { %v1488_v32 = vsel %vm1478_vm5, %v1463_v1, %v1400_v25  ;;  %v1465_v3 = vsel %vm1453_vm4, %v523_v49, %v1308_v24  ;;  %v358_v45 = vrot.slane %v319_v8, 4 }
 0x1bc   : > { %2389 = vmatmul.msk.f32.gmra.mxu1 %vm1572_vm6, %v1488_v32  ;;  %v1547_v26 = vrot.slane %v1488_v32, 1  ;;  %v1792_v61 = vrot.slane %v1488_v32, 2 }
 0x1be   : > { %2371 = vmatmul.msk.f32.gmra.mxu0 %vm1572_vm6, %v1546_v59  ;;  %2397 = vmatmul.msk.f32.gmra.mxu3 %vm1572_vm6, %v3958_v13  ;;  %v343_v13 = vperm.slane %v337_v60, %v2987_v52 }
 0x1bf   : > { %2407 = vmatmul.msk.f32.gmra.mxu2 %vm1572_vm6, %v1791_v43  ;;  %v1404_v14 = vpop.permute.xlu0 %1403  ;;  %v1318_v59 = vpop.permute.xlu2 %1317 }
 0x1c0   : > { %v1490_v28 = vsel %vm1478_vm5, %v1465_v3, %v1404_v14  ;;  %v356_v12 = vrot.slane %v343_v13, 4  ;;  %v359_v39 = vsel %vm252_vm0, %v343_v13, %v358_v45  ;;  %v1470_v53 = vsel %vm1453_vm4, %v3734_v27, %v1318_v59 }
 0x1c1   : > { %v1402_v19 = vpop.permute.xlu1 %1401  ;;  %v1550_v16 = vrot.slane %v1490_v28, 1  ;;  %v1795_v0 = vrot.slane %v1490_v28, 2 }
 0x1c2   : > { %v1489_v36 = vsel %vm1478_vm5, %v1464_v23, %v1402_v19  ;;  %v357_v51 = vsel %vm252_vm0, %v356_v12, %v319_v8 }
 0x1c3   : > { %v1548_v58 = vrot.slane %v1489_v36, 1  ;;  %v1793_v11 = vrot.slane %v1489_v36, 2 }
 0x1c4   : > { %2390 = vmatmul.msk.f32.gmra.mxu1 %vm1572_vm6, %v1489_v36 }
 0x1c5   : > { %v1549_v42 = vsel %vm563_vm1, %v1547_v26, %v1548_v58  ;;  %v1794_v30 = vsel %vm912_vm2, %v1792_v61, %v1793_v11  ;;  %v1551_v15 = vsel %vm563_vm1, %v1548_v58, %v1550_v16  ;;  %v1796_v41 = vsel %vm912_vm2, %v1793_v11, %v1795_v0 }
 0x1c6   : > { %2372 = vmatmul.msk.f32.gmra.mxu0 %vm1572_vm6, %v1549_v42  ;;  %2398 = vmatmul.msk.f32.gmra.mxu3 %vm1572_vm6, %v3964_v20  ;;  %v509_v20 = vsel %vm252_vm0, %v508_v18, %v3890_v55 }
 0x1c7   : > { %2408 = vmatmul.msk.f32.gmra.mxu2 %vm1572_vm6, %v1794_v30  ;;  %v1406_v48 = vpop.permute.xlu0 %1405  ;;  %v515_v6 = vperm.slane %v509_v20, %v2987_v52  ;;  %v1320_v60 = vpop.permute.xlu2 %1319 }
 0x1c9   : > { %v1310_v62 = vpop.permute.xlu1 %1309  ;;  %v524_v32 = vrot.slane %v515_v6, 4 }
 0x1ca   : > { %v1466_v50 = vsel %vm1453_vm4, %v357_v51, %v1310_v62 }
 0x1cb   : > { %v1491_v44 = vsel %vm1478_vm5, %v1466_v50, %v1406_v48  ;;  %v525_v13 = vsel %vm252_vm0, 0.0, %v524_v32 }
 0x1cc   : > { %2391 = vmatmul.msk.f32.gmra.mxu1 %vm1572_vm6, %v1491_v44  ;;  %v1552_v10 = vrot.slane %v1491_v44, 1  ;;  %v1797_v7 = vrot.slane %v1491_v44, 2 }
 0x1ce   : > { %2373 = vmatmul.msk.f32.gmra.mxu0 %vm1572_vm6, %v1551_v15  ;;  %2414 = vmatmul.msk.f32.vlgmr.msra.gmra.mxu3 %vm1572_vm6, %v4015_v57  ;;  %v1468_v57 = vsel %vm1453_vm4, %v515_v6, %v1314_v63 }
 0x1cf   : > { %2409 = vmatmul.msk.f32.gmra.mxu2 %vm1572_vm6, %v1796_v41  ;;  %v1410_v34 = vpop.permute.xlu0 %1409 }
 0x1d0   : > { %v1493_v29 = vsel %vm1478_vm5, %v1468_v57, %v1410_v34 }
 0x1d1   : > { %v1408_v35 = vpop.permute.xlu1 %1407  ;;  %v1555_v43 = vrot.slane %v1493_v29, 1  ;;  %v1800_v24 = vrot.slane %v1493_v29, 2 }
 0x1d2   : > { %v1492_v40 = vsel %vm1478_vm5, %v1467_v22, %v1408_v35 }
 0x1d3   : > { %v1553_v56 = vrot.slane %v1492_v40, 1  ;;  %v1798_v33 = vrot.slane %v1492_v40, 2 }
 0x1d4   : > { %2392 = vmatmul.msk.f32.gmra.mxu1 %vm1572_vm6, %v1492_v40 }
 0x1d5   : > { %v1554_v55 = vsel %vm563_vm1, %v1552_v10, %v1553_v56  ;;  %v1799_v54 = vsel %vm912_vm2, %v1797_v7, %v1798_v33  ;;  %v1556_v9 = vsel %vm563_vm1, %v1553_v56, %v1555_v43 }
 0x1d6   : > { %2374 = vmatmul.msk.f32.gmra.mxu0 %vm1572_vm6, %v1554_v55  ;;  %2415 = vmatmul.msk.f32.gmra.mxu3 %vm1572_vm6, %v4033_v47  ;;  %v1801_v47 = vsel %vm912_vm2, %v1798_v33, %v1800_v24 }
 0x1d7   : > { %2410 = vmatmul.msk.f32.gmra.mxu2 %vm1572_vm6, %v1799_v54  ;;  %v1412_v25 = vpop.permute.xlu0 %1411 }
 0x1d9   : > { %v1316_v21 = vpop.permute.xlu1 %1315 }
 0x1da   : > { %v1469_v1 = vsel %vm1453_vm4, %v359_v39, %v1316_v21 }
 0x1db   : > { %v1494_v38 = vsel %vm1478_vm5, %v1469_v1, %v1412_v25 }
 0x1dc   : > { %2393 = vmatmul.msk.f32.gmra.mxu1 %vm1572_vm6, %v1494_v38  ;;  %v1557_v3 = vrot.slane %v1494_v38, 1  ;;  %v1802_v14 = vrot.slane %v1494_v38, 2 }
 0x1de   : > { %2375 = vmatmul.msk.f32.gmra.mxu0 %vm1572_vm6, %v1556_v9  ;;  %2416 = vmatmul.msk.f32.gmra.mxu3 %vm1572_vm6, %v4051_v4  ;;  %v1471_v4 = vsel %vm1453_vm4, %v525_v13, %v1320_v60 }
 0x1df   : > { %2411 = vmatmul.msk.f32.gmra.mxu2 %vm1572_vm6, %v1801_v47  ;;  %v1416_v23 = vpop.permute.xlu0 %1415 }
 0x1e0   : > { %v1496_v27 = vsel %vm1478_vm5, %v1471_v4, %v1416_v23 }
 0x1e1   : > { %v1414_v17 = vpop.permute.xlu1 %1413  ;;  %v1560_v16 = vrot.slane %v1496_v27, 1  ;;  %v1805_v0 = vrot.slane %v1496_v27, 2 }
 0x1e2   : > { %v1495_v49 = vsel %vm1478_vm5, %v1470_v53, %v1414_v17 }
 0x1e3   : > { %v1558_v28 = vrot.slane %v1495_v49, 1  ;;  %v1803_v19 = vrot.slane %v1495_v49, 2 }
 0x1e4   : > { %2394 = vmatmul.msk.f32.gmra.mxu1 %vm1572_vm6, %v1495_v49 }
 0x1e5   : > { %v1559_v31 = vsel %vm563_vm1, %v1557_v3, %v1558_v28  ;;  %v1804_v37 = vsel %vm912_vm2, %v1802_v14, %v1803_v19  ;;  %v1561_v36 = vsel %vm563_vm1, %v1558_v28, %v1560_v16  ;;  %v1806_v26 = vsel %vm912_vm2, %v1803_v19, %v1805_v0 }
 0x1e6   : > { %2376 = vmatmul.msk.f32.gmra.mxu0 %vm1572_vm6, %v1559_v31  ;;  %2417 = vmatmul.msk.f32.gmra.mxu3 %vm1572_vm6, %v1816_v2  ;;  %vm2240_vm1 = vcmask 457728   ;;  %vm2242_vm2 = vcmask 490496  }
 0x1e7   : > { %2412 = vmatmul.msk.f32.gmra.mxu2 %vm1572_vm6, %v1804_v37 }
 0x1ee   : > { %2377 = vmatmul.msk.f32.gmra.mxu0 %vm1572_vm6, %v1561_v36 }
 0x1ef   : > { %2413 = vmatmul.msk.f32.gmra.mxu2 %vm1572_vm6, %v1806_v26 }
 0x208   : > { %v1726_v61 = vpop.f32.mrf.mxu1  ;;  %v4123_v46 = vpop.f32.mrf.mxu3 }
 0x20b   : > { %v1626_v58 = vpop.f32.mrf.mxu0 }
 0x20c   : > { %v1727_v11 = vadd.f32 %v1726_v61, %v1626_v58 }
 0x210   : > { %v1729_v8 = vpop.f32.mrf.mxu1  ;;  %v4127_v12 = vpop.f32.mrf.mxu3 }
 0x211   : > { %v1869_v42 = vpop.f32.mrf.mxu2 }
 0x212   : > { %v4125_v30 = vadd.f32 %v1869_v42, %v1727_v11 }
 0x213   : > { %v1629_v15 = vpop.f32.mrf.mxu0 }
 0x214   : > { %v1730_v41 = vadd.f32 %v1729_v8, %v1629_v15  ;;  %v1935_v36 = vrot.slane %v4125_v30, 4 }
 0x218   : > { %v1732_v2 = vpop.f32.mrf.mxu1 }
 0x219   : > { %v4131_v18 = vpop.f32.mrf.mxu3 }
 0x21a   : > { %v1872_v48 = vpop.f32.mrf.mxu2 }
 0x21b   : > { %v4129_v62 = vadd.f32 %v1872_v48, %v1730_v41  ;;  %v1632_v51 = vpop.f32.mrf.mxu0 }
 0x21c   : > { %v1733_v49 = vadd.f32 %v1732_v2, %v1632_v51 }
 0x220   : > { %v1735_v50 = vpop.f32.mrf.mxu1 }
 0x222   : > { %v1875_v44 = vpop.f32.mrf.mxu2 }
 0x223   : > { %v1635_v63 = vpop.f32.mrf.mxu0  ;;  %v1919_v19 = vadd.f32 %v1875_v44, %v1733_v49 }
 0x224   : > { %v1736_v20 = vadd.f32 %v1735_v50, %v1635_v63  ;;  %v2047_v50 = vrot.slane %v4129_v62, 4 }
 0x225   : > { %v1947_v26 = vrot.slane %v1919_v19, 4 }
 0x229   : > { %v4133_v34 = vpop.f32.mrf.mxu3  ;;  %v1738_v22 = vpop.f32.mrf.mxu1 }
 0x22a   : > { %v1878_v35 = vpop.f32.mrf.mxu2 }
 0x22b   : > { %v1920_v6 = vadd.f32 %v1878_v35, %v1736_v20 }
 0x22d   : > { %v2059_v37 = vrot.slane %v1920_v6, 4 }
 0x231   : > { %v1762_v40 = vpop.f32.mrf.mxu3  ;;  %v1741_v7 = vpop.f32.mrf.mxu1 }
 0x232   : > { %v1763_v44 = vadd.f32 %v1762_v40, %v4123_v46 }
 0x233   : > { %v1638_v10 = vpop.f32.mrf.mxu0 }
 0x234   : > { %v1739_v9 = vadd.f32 %v1738_v22, %v1638_v10 }
 0x239   : > { %v4135_v56 = vpop.f32.mrf.mxu3  ;;  %v1744_v55 = vpop.f32.mrf.mxu1 }
 0x23a   : > { %v1881_v33 = vpop.f32.mrf.mxu2 }
 0x23b   : > { %v1641_v57 = vpop.f32.mrf.mxu0  ;;  %v1921_v3 = vadd.f32 %v1881_v33, %v1739_v9 }
 0x23c   : > { %v1742_v39 = vadd.f32 %v1741_v7, %v1641_v57 }
 0x23d   : > { %v1933_v4 = vrot.slane %v1921_v3, 4  ;;  %v1936_v15 = vsel %vm252_vm0, %v1921_v3, %v1935_v36 }
 0x23e   : > { %v1944_v22 = vperm.slane %v1936_v15, %v2929_v5 }
 0x23f   : > { %v1934_v42 = vsel %vm252_vm0, %v1933_v4, %v4125_v30 }
 0x240   : > { %v1940_v30 = vperm.slane %v1934_v42, %v2929_v5 }
 0x241   : > { %v1768_v54 = vpop.f32.mrf.mxu3  ;;  %v1747_v59 = vpop.f32.mrf.mxu1 }
 0x242   : > { %v1884_v45 = vpop.f32.mrf.mxu2 }
 0x243   : > { %v1644_v29 = vpop.f32.mrf.mxu0  ;;  %v1922_v24 = vadd.f32 %v1884_v45, %v1742_v39  ;;  %v1995_v45 = vrot.slane %v1944_v22, 4 }
 0x244   : > { %v1745_v53 = vadd.f32 %v1744_v55, %v1644_v29  ;;  %v1983_v55 = vrot.slane %v1940_v30, 4  ;;  %v1769_v29 = vadd.f32 %v1768_v54, %v4131_v18 }
 0x245   : > { %v2045_v14 = vrot.slane %v1922_v24, 4  ;;  %v2048_v33 = vsel %vm252_vm0, %v1922_v24, %v2047_v50 }
 0x247   : > { %v2046_v27 = vsel %vm252_vm0, %v2045_v14, %v4129_v62 }
 0x248   : > { %v2052_v41 = vperm.slane %v2046_v27, %v2929_v5 }
 0x249   : > { %v4137_v43 = vpop.f32.mrf.mxu3  ;;  %v1750_v47 = vpop.f32.mrf.mxu1 }
 0x24a   : > { %v1887_v25 = vpop.f32.mrf.mxu2 }
 0x24b   : > { %v1647_v21 = vpop.f32.mrf.mxu0  ;;  %v1923_v23 = vadd.f32 %v1887_v25, %v1745_v53  ;;  %v2056_v25 = vperm.slane %v2048_v33, %v2929_v5  ;;  %v1766_v53 = vadd.f32 %v4135_v56, %v4127_v12 }
 0x24c   : > { %v1748_v1 = vadd.f32 %v1747_v59, %v1647_v21  ;;  %v2095_v21 = vrot.slane %v2052_v41, 4 }
 0x24d   : > { %v1945_v16 = vrot.slane %v1923_v23, 4  ;;  %v1948_v2 = vsel %vm252_vm0, %v1923_v23, %v1947_v26 }
 0x24e   : > { %v1956_v35 = vperm.slane %v1948_v2, %v2929_v5 }
 0x24f   : > { %v1946_v51 = vsel %vm252_vm0, %v1945_v16, %v1919_v19 }
 0x250   : > { %v1952_v10 = vperm.slane %v1946_v51, %v2929_v5  ;;  %v1993_v59 = vrot.slane %v1956_v35, 4 }
 0x251   : > { %v1905_v38 = vpop.f32.mrf.mxu3  ;;  %v1753_v48 = vpop.f32.mrf.mxu1 }
 0x252   : > { %v1890_v32 = vpop.f32.mrf.mxu2  ;;  %v1929_v7 = vadd.f32 %v1905_v38, %v1763_v44  ;;  %v1981_v39 = vrot.slane %v1952_v10, 4  ;;  %v1984_v24 = vsel %vm252_vm0, %v1952_v10, %v1983_v55  ;;  %v1994_v14 = vsel %vm252_vm0, %v1993_v59, %v1944_v22 }
 0x253   : > { %v1924_v17 = vadd.f32 %v1890_v32, %v1748_v1  ;;  %v1650_v60 = vpop.f32.mrf.mxu0  ;;  %v1996_v32 = vsel %vm252_vm0, %v1956_v35, %v1995_v45  ;;  %v4185_v16 = vperm.slane %v1994_v14, %v2987_v52 }
 0x254   : > { %v1957_v1 = vrot.slane %v1929_v7, 4  ;;  %v4177_v19 = vperm.slane %v1996_v32, %v2987_v52  ;;  %v1982_v12 = vsel %vm252_vm0, %v1981_v39, %v1940_v30 }
 0x255   : > { %v2057_v28 = vrot.slane %v1924_v17, 4  ;;  %v2060_v11 = vsel %vm252_vm0, %v1924_v17, %v2059_v37  ;;  %v1772_v37 = vadd.f32 %v4137_v43, %v4133_v34 }
 0x256   : > { %v4154_v63 = vperm.slane %v2060_v11, %v2929_v5  ;;  %v2043_v15 = vrot.slane %v4177_v19, 4 }
 0x257   : > { %v2058_v13 = vsel %vm252_vm0, %v2057_v28, %v1920_v6  ;;  %v1751_v6 = vadd.f32 %v1750_v47, %v1650_v60  ;;  %v1992_v28 = vperm.slane %v1984_v24, %v2987_v52 }
 0x258   : > { %v2064_v31 = vperm.slane %v2058_v13, %v2929_v5  ;;  %v2105_v46 = vrot.slane %v4154_v63, 4 }
 0x259   : > { %v1908_v0 = vpop.f32.mrf.mxu3  ;;  %v1756_v17 = vpop.f32.mrf.mxu1  ;;  %v2035_v42 = vrot.slane %v1992_v28, 4 }
 0x25a   : > { %v2093_v61 = vrot.slane %v2064_v31, 4  ;;  %v1893_v58 = vpop.f32.mrf.mxu2  ;;  %v2096_v18 = vsel %vm252_vm0, %v2064_v31, %v2095_v21  ;;  %v4172_v54 = vsel %vm252_vm0, %v2105_v46, %v2056_v25  ;;  %v1930_v23 = vadd.f32 %v1908_v0, %v1766_v53 }
 0x25b   : > { %v1653_v8 = vpop.f32.mrf.mxu0  ;;  %v1925_v62 = vadd.f32 %v1893_v58, %v1751_v6  ;;  %v2107_v31 = vrot.slane %v2056_v25, 4  ;;  %v4188_v58 = vperm.slane %v1982_v12, %v2987_v52  ;;  %v2039_v6 = vrot.slane %v4185_v16, 4 }
 0x25c   : > { %v2094_v20 = vsel %vm252_vm0, %v2093_v61, %v2052_v41  ;;  %v1754_v38 = vadd.f32 %v1753_v48, %v1653_v8  ;;  %v2069_v8 = vrot.slane %v1930_v23, 4  ;;  %v2104_v32 = vperm.slane %v2096_v18, %v2987_v52 }
 0x25d   : > { %v1959_v47 = vrot.slane %v1925_v62, 4  ;;  %v1958_v60 = vsel %vm252_vm0, %v1957_v1, %v1925_v62  ;;  %v4194_v2 = vperm.slane %v2094_v20, %v2987_v52  ;;  %v2108_v30 = vsel %vm252_vm0, %v4154_v63, %v2107_v31 }
 0x25e   : > { %v1964_v13 = vperm.slane %v1958_v60, %v2929_v5  ;;  %v2031_v10 = vrot.slane %v4188_v58, 4  ;;  %v2116_v53 = vperm.slane %v2108_v30, %v2987_v52  ;;  %v2112_v18 = vperm.slane %v4172_v54, %v2987_v52 }
 0x25f   : > { %v1960_v56 = vsel %vm252_vm0, %v1929_v7, %v1959_v47  ;;  %v2143_v55 = vrot.slane %v4194_v2, 4 }
 0x260   : > { %v1968_v11 = vperm.slane %v1960_v56, %v2929_v5  ;;  %v2007_v41 = vrot.slane %v1964_v13, 4  ;;  %v2155_v54 = vrot.slane %v2116_v53, 4 }
 0x261   : > { %v1911_v57 = vpop.f32.mrf.mxu3  ;;  %v1759_v20 = vpop.f32.mrf.mxu1 }
 0x262   : > { %v1896_v40 = vpop.f32.mrf.mxu2  ;;  %v1931_v3 = vadd.f32 %v1911_v57, %v1769_v29  ;;  %v2019_v7 = vrot.slane %v1968_v11, 4 }
 0x263   : > { %v1656_v9 = vpop.f32.mrf.mxu0  ;;  %v1926_v49 = vadd.f32 %v1896_v40, %v1754_v38 }
 0x264   : > { %v1757_v4 = vadd.f32 %v1756_v17, %v1656_v9  ;;  %v1969_v36 = vrot.slane %v1931_v3, 4 }
 0x265   : > { %v2071_v0 = vrot.slane %v1926_v49, 4  ;;  %v2070_v48 = vsel %vm252_vm0, %v2069_v8, %v1926_v49 }
 0x266   : > { %v2076_v46 = vperm.slane %v2070_v48, %v2929_v5 }
 0x267   : > { %v2072_v22 = vsel %vm252_vm0, %v1930_v23, %v2071_v0 }
 0x268   : > { %v2080_v45 = vperm.slane %v2072_v22, %v2929_v5  ;;  %v2119_v56 = vrot.slane %v2076_v46, 4 }
 0x269   : > { %v1914_v61 = vpop.f32.mrf.mxu3 }
 0x26a   : > { %v1899_v27 = vpop.f32.mrf.mxu2  ;;  %v1932_v50 = vadd.f32 %v1914_v61, %v1772_v37  ;;  %v2147_v61 = vrot.slane %v2104_v32, 4 }
 0x26b   : > { %v1927_v26 = vadd.f32 %v1899_v27, %v1757_v4  ;;  %v1659_v44 = vpop.f32.mrf.mxu0 }
 0x26c   : > { %v1760_v40 = vadd.f32 %v1759_v20, %v1659_v44  ;;  %v2081_v59 = vrot.slane %v1932_v50, 4 }
 0x26d   : > { %v1970_v34 = vsel %vm252_vm0, %v1969_v36, %v1927_v26  ;;  %v1971_v43 = vrot.slane %v1927_v26, 4 }
 0x26e   : > { %v1976_v51 = vperm.slane %v1970_v34, %v2929_v5  ;;  %v2151_v34 = vrot.slane %v2112_v18, 4 }
 0x26f   : > { %v1972_v35 = vsel %vm252_vm0, %v1931_v3, %v1971_v43 }
 0x270   : > { %v1980_v33 = vperm.slane %v1972_v35, %v2929_v5  ;;  %v2005_v62 = vrot.slane %v1976_v51, 4  ;;  %v2008_v57 = vsel %vm252_vm0, %v1976_v51, %v2007_v41 }
 0x271   : > { %v2016_v63 = vperm.slane %v2008_v57, %v2987_v52 }
 0x272   : > { %v2017_v29 = vrot.slane %v1980_v33, 4  ;;  %v1902_v25 = vpop.f32.mrf.mxu2  ;;  %v2020_v21 = vsel %vm252_vm0, %v1980_v33, %v2019_v7  ;;  %v2006_v24 = vsel %vm252_vm0, %v2005_v62, %v1964_v13  ;;  %v2131_v13 = vrot.slane %v2080_v45, 4 }
 0x273   : > { %v1928_v39 = vadd.f32 %v1902_v25, %v1760_v40  ;;  %v2036_v1 = vsel %vm252_vm0, %v2016_v63, %v2035_v42  ;;  %v2028_v9 = vperm.slane %v2020_v21, %v2987_v52  ;;  %v2033_v47 = vrot.slane %v2016_v63, 4 }
 0x274   : > { %2166 = vrot.lane.b32.xlu0 %v2036_v1, %s2654_s6  ;;  %v2018_v38 = vsel %vm252_vm0, %v2017_v29, %v1968_v11  ;;  %v4227_v31 = vperm.slane %v2006_v24, %v2987_v52  ;;  %s2419_s6 = sshll.u32 %s2619_s16, 1 }
 0x275   : > { %v2082_v17 = vsel %vm252_vm0, %v2081_v59, %v1928_v39  ;;  %v2083_v60 = vrot.slane %v1928_v39, 4  ;;  %v2044_v49 = vsel %vm252_vm0, %v2028_v9, %v2043_v15  ;;  %v2034_v3 = vsel %vm252_vm0, %v2033_v47, %v1992_v28 }
 0x276   : > { %v2088_v14 = vperm.slane %v2082_v17, %v2929_v5  ;;  %2182 = vrot.lane.b32.xlu1 %v2044_v49, %s2655_s7  ;;  %2162 = vrot.lane.b32.xlu2 %v2034_v3, %s2652_s29  ;;  %v2041_v23 = vrot.slane %v2028_v9, 4  ;;  %v2024_v12 = vperm.slane %v2018_v38, %v2987_v52  ;;  %s2656_s29 = smov 24   ;;  %v2032_v43 = vsel %vm252_vm0, %v4227_v31, %v2031_v10  ;;  %s185_s7 = sand.u32 1, %s2607_s13  }
 0x277   : > { %v2084_v4 = vsel %vm252_vm0, %v1932_v50, %v2083_v60  ;;  %v2029_v40 = vrot.slane %v4227_v31, 4 }
 0x278   : > { %v2092_v28 = vperm.slane %v2084_v4, %v2929_v5  ;;  %v2117_v37 = vrot.slane %v2088_v14, 4  ;;  %v2042_v27 = vsel %vm252_vm0, %v2041_v23, %v4177_v19  ;;  %v2040_v0 = vsel %vm252_vm0, %v2024_v12, %v2039_v6 }
 0x279   : > { %v2037_v36 = vrot.slane %v2024_v12, 4  ;;  %v2120_v26 = vsel %vm252_vm0, %v2088_v14, %v2119_v56  ;;  %v2533_v14 = vld [vmem:[%s4311_s2] ss:$0 sm:$0xff] }
 0x27a   : > { %v2129_v11 = vrot.slane %v2092_v28, 4  ;;  %v2118_v8 = vsel %vm252_vm0, %v2117_v37, %v2076_v46  ;;  %v2128_v42 = vperm.slane %v2120_v26, %v2987_v52  ;;  %v2132_v15 = vsel %vm252_vm0, %v2092_v28, %v2131_v13 }
 0x27b   : > { %v2124_v5 = vperm.slane %v2118_v8, %v2987_v52  ;;  %v2038_v41 = vsel %vm252_vm0, %v2037_v36, %v4185_v16  ;;  %v2140_v19 = vperm.slane %v2132_v15, %v2987_v52 }
 0x27c   : > { %2178 = vrot.lane.b32.xlu0 %v2042_v27, %s2656_s29  ;;  %v2148_v48 = vsel %vm252_vm0, %v2128_v42, %v2147_v61  ;;  %v2130_v51 = vsel %vm252_vm0, %v2129_v11, %v2080_v45  ;;  %v2145_v50 = vrot.slane %v2128_v42, 4  ;;  %v2030_v45 = vsel %vm252_vm0, %v2029_v40, %v4188_v58  ;;  %s2266_s29 = sadd.s32 %s2615_s15, %s2419_s6  ;;  %s2256_s15 = scalar_lea.sflag [#allocation3], %s185_s7 }
 0x27d   : > { %v2144_v44 = vsel %vm252_vm0, %v2124_v5, %v2143_v55  ;;  %v2136_v30 = vperm.slane %v2130_v51, %v2987_v52  ;;  %v2141_v22 = vrot.slane %v2124_v5, 4  ;;  %v2156_v16 = vsel %vm252_vm0, %v2140_v19, %v2155_v54  ;;  %s2557_s6 = scalar_lea.hbm %s4312_s3, 32 }
 0x27e   : > { %2174 = vrot.lane.b32.xlu2 %v2040_v0, %s2657_s8  ;;  %2158 = vrot.lane.b32.xlu1 %v2032_v43, %s2653_s4  ;;  %v2146_v35 = vsel %vm252_vm0, %v2145_v50, %v2104_v32  ;;  %v2153_v6 = vrot.slane %v2140_v19, 4  ;;  %s2661_s4 = smov 48   ;;  %s2359_s8 = sshll.u32 %s185_s7, 3 }
 0x27f   : > { %v2149_v10 = vrot.slane %v2136_v30, 4  ;;  %v2142_v7 = vsel %vm252_vm0, %v2141_v22, %v4194_v2  ;;  %v2152_v20 = vsel %vm252_vm0, %v2136_v30, %v2151_v34 }
 0x280   : > { %v2154_v33 = vsel %vm252_vm0, %v2153_v6, %v2116_v53 }
 0x281   : > { %v2150_v52 = vsel %vm252_vm0, %v2149_v10, %v2112_v18  ;;  %vm2238_vm0 = vcmask 424960  }
 0x284   : > { %2190 = vrot.lane.b32.xlu0 %v2144_v44, %s2658_s9  ;;  %s2420_s9 = sshll.u32 %s2266_s29, 3 }
 0x286   : > { %2170 = vrot.lane.b32.xlu1 %v2038_v41, %s2659_s10  ;;  %2198 = vrot.lane.b32.xlu2 %v2148_v48, %s2660_s20 }
 0x28c   : > { %2202 = vrot.lane.b32.xlu0 %v2150_v52, %s2661_s4  ;;  %s2268_s4 = scalar_lea.hbm %s4312_s3, %s2420_s9 }
 0x28e   : > { %2194 = vrot.lane.b32.xlu1 %v2146_v35, %s2662_s11  ;;  %2186 = vrot.lane.b32.xlu2 %v2142_v7, %s2663_s21  ;;  %s187_s11 = scalar_lea.vmem [#allocation2], %s2359_s8 }
 0x28f   : > { %s2270_s21 = sshll.u32 %s187_s11, 4  ;;  %s2271_s21 = int_to_ptr.vmem [resolvable:$true] %s2270_s21 }
 0x294   : > { %2214 = vrot.lane.b32.xlu0 %v2156_v16, %s2649_s28 }
 0x296   : > { %2206 = vrot.lane.b32.xlu1 %v2152_v20, %s2664_s24  ;;  %2210 = vrot.lane.b32.xlu2 %v2154_v33, %s2665_s27  ;;  %s2272_s24 = sshll.u32 %s2268_s4, 4  ;;  %s2273_s24 = int_to_ptr.hbm [resolvable:$true] %s2272_s24 }
 0x297   : > { %s2551_s16 = sshra.s32 %s2273_s24, 4  ;;  %s2552_s16 = int_to_ptr.hbm [resolvable:$true] %s2551_s16 }
 0x298   : > { %s2553_s27 = scalar_lea.hbm %s2552_s16, 8  ;;  %p2558_p4 = scmp.lt.s32.totalorder %s2552_s16, %s4312_s3 }
 0x299   : > { %p2554_p0 = scmp.ne.s32.totalorder %s2552_s16, %s2553_s27  ;;  %p2559_p5 = scmp.lt.s32.totalorder %s2557_s6, %s2553_s27 }
 0x29b   : > { %p2555_p1 = pnand %p2554_p0, %p2737_p3  ;;  %p2560_p6 = por %p2559_p5, %p2558_p4 }
 0x29d   : > { %p2556_p2 = pneg %p2555_p1 }
 0x29f   : > { %p2561_p7 = pnand %p2560_p6, %p2556_p2 }
 0x2d0   : > { %v2163_v2 = vpop.permute.xlu2 %2162 }
 0x2d8   : > { %v2175_v46 = vpop.permute.xlu2 %2174 }
 0x2e0   : > { %v2199_v59 = vpop.permute.xlu2 %2198 }
 0x2e6   : > { %v2167_v62 = vpop.permute.xlu0 %2166 }
 0x2e8   : > { %v2183_v57 = vpop.permute.xlu1 %2182  ;;  %v2187_v32 = vpop.permute.xlu2 %2186 }
 0x2ee   : > { %v2179_v63 = vpop.permute.xlu0 %2178 }
 0x2f0   : > { %v2159_v55 = vpop.permute.xlu1 %2158  ;;  %v2211_v18 = vpop.permute.xlu2 %2210 }
 0x2f1   : > { %v2217_v29 = vsel %vm1453_vm4, %v2030_v45, %v2159_v55 }
 0x2f2   : > { %v2218_v25 = vsel %vm1478_vm5, %v2217_v29, %v2163_v2 }
 0x2f3   : > { %v2219_v1 = vsel %vm1572_vm6, %v2218_v25, %v2167_v62 }
 0x2f6   : > { %v2191_v21 = vpop.permute.xlu0 %2190 }
 0x2f8   : > { %v2171_v39 = vpop.permute.xlu1 %2170 }
 0x2f9   : > { %v2221_v9 = vsel %vm2220_vm7, %v2219_v1, %v2171_v39 }
 0x2fa   : > { %v2223_v47 = vsel %vm2222_vm8, %v2221_v9, %v2175_v46 }
 0x2fb   : > { %v2225_v38 = vsel %vm2224_vm9, %v2223_v47, %v2179_v63 }
 0x2fc   : > { %v2227_v24 = vsel %vm2226_vm10, %v2225_v38, %v2183_v57 }
 0x2fd   : > { %v2229_v58 = vsel %vm2228_vm11, %v2227_v24, %v2187_v32 }
 0x2fe   : > { %v2203_v53 = vpop.permute.xlu0 %2202  ;;  %v2231_v60 = vsel %vm2230_vm12, %v2229_v58, %v2191_v21 }
 0x300   : > { %v2195_v17 = vpop.permute.xlu1 %2194 }
 0x301   : > { %v2233_v49 = vsel %vm2232_vm13, %v2231_v60, %v2195_v17 }
 0x302   : > { %v2235_v3 = vsel %vm2234_vm14, %v2233_v49, %v2199_v59 }
 0x303   : > { %v2237_v12 = vsel %vm2236_vm15, %v2235_v3, %v2203_v53 }
 0x306   : > { %v2215_v13 = vpop.permute.xlu0 %2214 }
 0x308   : > { %v2207_v23 = vpop.permute.xlu1 %2206 }
 0x309   : > { %v2239_v56 = vsel %vm2238_vm0, %v2237_v12, %v2207_v23 }
 0x30a   : > { %v2241_v4 = vsel %vm2240_vm1, %v2239_v56, %v2211_v18 }
 0x30b   : > { %v2243_v31 = vsel %vm2242_vm2, %v2241_v4, %v2215_v13 }
 0x30c   : > { %v2248_v28 = vadd.f32 %v2533_v14, %v2243_v31 }
 0x30e   : > { %v2249_v37 = vmul.f32 0.5, %v2248_v28 }
 0x310   : > { %2534 = vtanh.f32 %v2249_v37 }
 0x316   : > { %v2535_v27 = vpop.eup %2534 }
 0x317   : > { %v2251_v0 = vmul.f32 0.5, %v2535_v27 }
 0x319   : > { %v2252_v36 = vadd.f32 0.5, %v2251_v0 }
 0x31b   : > { %2254 = vst.msk [vmem:[%s187_s11] sm:$0xff] %vm2253_vm3, %v2252_v36 }
 0x31c   : > { %2564 = shalt.err (!%p2561_p7)
}
 0x31d   : > { %2429 = dma.vmem_to_hbm [thread:$0]  (%p2737_p3), %s2271_s21, 128, %s2273_s24, %s2256_s15  }
 0x31e PF: > { %p2435_p9 = scmp.ge.s32.totalorder %s2631_s19, 2  ;;  %s2284_s7 = sand.u32 1, %s2603_s12  }
 0x31f   : > { %s2285_s9 = scalar_lea.sflag [#allocation3], %s2284_s7 }
 0x320   : > { %p2432_p10 = pnand %p2435_p9, %p2746_p8 }
 0x322   : > { %p2433_p11 = pneg %p2432_p10 }
 0x324   : > { %2598 = dma.done.wait (%p2433_p11), %s2285_s9, 128  }
 0x325   : > { %2600 = vsyncadd (%p2433_p11), %s2285_s9, 4294967168  ;;  %s16_s19 = sadd.s32 1, %s2631_s19   ;;  %s4410_s12 = smov %s2607_s13 }
 0x326   : > { %p13_p12 = scmp.ge.s32.totalorder %s16_s19, 6   ;;  %s4411_s13 = smov %s2611_s14 }
 0x327   : > { %s4412_s14 = smov %s2755_s30  ;;  %s4413_s15 = smov %s2623_s17 }
 0x328   : > { %s4414_s16 = smov %s2627_s18  ;;  %s4415_s17 = smov %s4418_s22 }
 0x329   : > { %s4416_s18 = smov %s4422_s23  ;;  %15 = sbr.rel (!%p13_p12) target bundleno = 5 (0x5), region = 69 }
 0x32e   :  { %2291 = vsyncpa [#allocation3], 1 }
 0x32f   :  { %2293 = vsyncpa [#allocation3 + $0x1], 1 }

</bundles_post_ra>
